<compile_context>
chip_gen: v7x
topology: tpu7x:2x2x1
jax: 0.10.0
libtpu: 0.0.40
codegen_flags: <defaults>
</compile_context>

<pallas_src>
import functools

import jax
import jax.numpy as jnp
from jax import lax
from jax.experimental import pallas as pl
from jax.experimental.pallas import tpu as pltpu


# ----------------------------------------------------------------------------
# Helpers
# ----------------------------------------------------------------------------
def _round_up(x, m):
    return ((x + m - 1) // m) * m


def _pick_time_block(T, max_block=256):
    """Largest time block <= max_block that divides T (batch is padded to the
    8-sublane granule, so any Tb is (8,128)-legal)."""
    if T <= max_block:
        return T
    for tb in range(max_block, 0, -1):
        if T % tb == 0:
            return tb
    return T


# ----------------------------------------------------------------------------
# Fused multi-layer LSTM + FC-head kernel
# ----------------------------------------------------------------------------
def _fused_pixel_lstm_kernel(*refs, num_layers, hidden_dim, t_block, unroll,
                             n_act, matmul_dtype):
    L, H, Tb = num_layers, hidden_dim, t_block

    # ---- unpack refs: inputs | outputs | scratch -----------------------------
    x_ref, h0_ref, c0_ref = refs[0], refs[1], refs[2]
    idx = 3
    layer_w = []
    for _ in range(L):
        layer_w.append((refs[idx], refs[idx + 1], refs[idx + 2]))
        idx += 3
    w_fc_ref, b_fc_ref = refs[idx], refs[idx + 1]
    idx += 2
    out_ref, hT_ref, cT_ref = refs[idx], refs[idx + 1], refs[idx + 2]
    idx += 3
    h_sc, c_sc, gx_sc = refs[idx], refs[idx + 1], refs[idx + 2]
    idx += 3
    act_sc = refs[idx:idx + n_act]

    Bp = h0_ref.shape[1]          # batch padded to the 8-sublane granule

    @pl.when(pl.program_id(0) == 0)
    def _init():
        h_sc[...] = h0_ref[...]
        c_sc[...] = c0_ref[...]

    # Per-lane scale/offset vectors for the fused gate nonlinearity, hoisted
    # out of both the layer loop and the time loop.  Exact identity:
    # sigmoid(x) = 0.5*tanh(x/2) + 0.5 on the i/f/o lanes, tanh(x) on g lanes,
    # so the whole (Bp,4H) gate vector takes one EUP tanh pass and two VPU ops.
    lane = lax.broadcasted_iota(jnp.int32, (Bp, 4 * H), 1)
    is_g = (lane >= 2 * H) & (lane < 3 * H)
    act_mul = jnp.where(is_g, 1.0, 0.5).astype(jnp.float32)
    act_add = jnp.where(is_g, 0.0, 0.5).astype(jnp.float32)

    w_fc_row = w_fc_ref[...].astype(jnp.float32)    # (1, H)
    b_fc = b_fc_ref[...].astype(jnp.float32)        # (1, 1)

    for l in range(L):
        w_ih = layer_w[l][0][...].astype(matmul_dtype)
        w_hh = layer_w[l][1][...].astype(matmul_dtype)
        bias = layer_w[l][2][...]
        is_last = (l == L - 1)

        # Hoisted input projection: one MXU matmul per layer per time block,
        # staged into VMEM scratch so each timestep only does an aligned
        # sublane row load (keeps vreg pressure bounded).
        x_blk = x_ref[...] if l == 0 else act_sc[(l - 1) % n_act][...]
        gx_sc[...] = jnp.dot(x_blk.astype(matmul_dtype), w_ih,
                             preferred_element_type=jnp.float32) + bias

        act_out = None if is_last else act_sc[l % n_act]
        h_prev0 = h_sc[l]
        c_prev0 = c_sc[l]

        def step(t, carry):
            h_prev, c_prev = carry
            row = pl.ds(pl.multiple_of(t * Bp, Bp), Bp)
            # Recurrent projection — the only matmul on the serial chain.
            # TODO(synk): keep W_hh resident in the MXU across the time loop
            # (pltpu.matmul_push_rhs / matmul_acc_lhs / matmul_pop).
            gates = gx_sc[row, :] + jnp.dot(
                h_prev.astype(matmul_dtype), w_hh,
                preferred_element_type=jnp.float32)
            acts = jnp.tanh(gates * act_mul) * act_mul + act_add
            i_g = acts[:, 0 * H:1 * H]
            f_g = acts[:, 1 * H:2 * H]
            g_g = acts[:, 2 * H:3 * H]
            o_g = acts[:, 3 * H:4 * H]
            c_new = f_g * c_prev + i_g * g_g
            h_new = o_g * jnp.tanh(c_new)
            if is_last:
                # Fused Linear(H, 1) head: VPU multiply + XLU lane reduce;
                # writes an aligned (Bp, 1) row block straight to the output.
                out_ref[row, :] = (jnp.sum(h_new * w_fc_row, axis=-1,
                                           keepdims=True) + b_fc)
            else:
                act_out[row, :] = h_new
            return h_new, c_new

        h_fin, c_fin = lax.fori_loop(0, Tb, step, (h_prev0, c_prev0),
                                     unroll=unroll)
        h_sc[l] = h_fin
        c_sc[l] = c_fin

    # Final states: written unconditionally every grid step (cheap VMEM store);
    # the constant-index output blocks carry the last step's values to HBM.
    hT_ref[...] = h_sc[...]
    cT_ref[...] = c_sc[...]


# ----------------------------------------------------------------------------
# Wrapper
# ----------------------------------------------------------------------------
def pixel_lstm_forward(x, hidden, params, *, matmul_dtype=jnp.float32):
    """Mirrors PixelLSTM.forward.

    x      : (B, T, input_dim)
    hidden : (h0, c0), each (num_layers, B, hidden_dim)
    returns (output (B, T, 1), (h_n, c_n))

    matmul_dtype: set to jnp.bfloat16 in production to use the bf16-native MXU
    path (gate/cell math stays f32); f32 here so validation is bit-tight.
    """
    h0_all, c0_all = hidden
    layer_params, (w_fc_row, b_fc) = params
    num_layers = len(layer_params)

    B, T, D = x.shape
    H = h0_all.shape[-1]
    Bp = _round_up(B, 8)                 # sublane-align the batch (free on HW)
    t_block = _pick_time_block(T)
    unroll = min(t_block, 8)
    n_act = min(num_layers - 1, 2)       # inter-layer activation ping-pong bufs

    # Time-major, batch padded, flattened to 2-D: contiguous x DMA, and every
    # per-step row access in the kernel is an 8-aligned sublane slice.
    x_tb = jnp.transpose(x, (1, 0, 2)).astype(jnp.float32)      # (T, B, D)
    if Bp != B:
        x_tb = jnp.pad(x_tb, ((0, 0), (0, Bp - B), (0, 0)))
        h0_all = jnp.pad(h0_all, ((0, 0), (0, Bp - B), (0, 0)))
        c0_all = jnp.pad(c0_all, ((0, 0), (0, Bp - B), (0, 0)))
    x_flat = x_tb.reshape(T * Bp, D)

    kernel = functools.partial(
        _fused_pixel_lstm_kernel, num_layers=num_layers, hidden_dim=H,
        t_block=t_block, unroll=unroll, n_act=n_act, matmul_dtype=matmul_dtype)

    in_specs = [
        pl.BlockSpec((t_block * Bp, D), lambda tb: (tb, 0)),           # x block
        pl.BlockSpec((num_layers, Bp, H), lambda tb: (0, 0, 0)),       # h0
        pl.BlockSpec((num_layers, Bp, H), lambda tb: (0, 0, 0)),       # c0
    ]
    flat_weights = []
    for (w_ih_t, w_hh_t, bias) in layer_params:
        in_dim = w_ih_t.shape[0]
        in_specs += [
            pl.BlockSpec((in_dim, 4 * H), lambda tb: (0, 0)),          # W_ih^T
            pl.BlockSpec((H, 4 * H), lambda tb: (0, 0)),               # W_hh^T
            pl.BlockSpec((1, 4 * H), lambda tb: (0, 0)),               # bias
        ]
        flat_weights += [w_ih_t, w_hh_t, bias]
    in_specs += [
        pl.BlockSpec((1, H), lambda tb: (0, 0)),                       # W_fc row
        pl.BlockSpec((1, 1), lambda tb: (0, 0)),                       # b_fc
    ]

    out_specs = [
        pl.BlockSpec((t_block * Bp, 1), lambda tb: (tb, 0)),           # head out
        pl.BlockSpec((num_layers, Bp, H), lambda tb: (0, 0, 0)),       # final h
        pl.BlockSpec((num_layers, Bp, H), lambda tb: (0, 0, 0)),       # final c
    ]
    out_shape = (
        jax.ShapeDtypeStruct((T * Bp, 1), jnp.float32),
        jax.ShapeDtypeStruct((num_layers, Bp, H), jnp.float32),
        jax.ShapeDtypeStruct((num_layers, Bp, H), jnp.float32),
    )
    scratch_shapes = (
        [pltpu.VMEM((num_layers, Bp, H), jnp.float32),                 # h carry
         pltpu.VMEM((num_layers, Bp, H), jnp.float32),                 # c carry
         pltpu.VMEM((t_block * Bp, 4 * H), jnp.float32)]               # staged gx
        + [pltpu.VMEM((t_block * Bp, H), jnp.float32)] * n_act)        # ping-pong

    # Explicit VMEM budget (clamped well under v7x's 64 MiB physical / 32 MiB
    # scoped default; on v5e/v6e this only raises the 16/32 MiB default).
    f32b = 4
    weight_bytes = sum(int(w.size) for w in flat_weights) * f32b + (H + 1) * f32b
    block_bytes = (t_block * Bp * (D + 1) + 4 * num_layers * Bp * H) * f32b
    scratch_bytes = (2 * num_layers * Bp * H + t_block * Bp * 4 * H
                     + n_act * t_block * Bp * H) * f32b
    est = 2 * (weight_bytes + block_bytes) + scratch_bytes   # double buffering
    vmem_limit = int(min(48 * 2 ** 20, max(16 * 2 ** 20, 2 * est)))

    # TODO(synk): on v7x add a leading "parallel" batch grid axis so the two
    # TensorCores split independent sequences.
    out_flat, hT, cT = pl.pallas_call(
        kernel,
        out_shape=out_shape,
        grid_spec=pltpu.PrefetchScalarGridSpec(
            num_scalar_prefetch=0,
            grid=(T // t_block,),
            in_specs=in_specs,
            out_specs=out_specs,
            scratch_shapes=scratch_shapes),
        compiler_params=pltpu.CompilerParams(
            dimension_semantics=("arbitrary",),      # recurrent time axis
            vmem_limit_bytes=vmem_limit),
    )(x_flat, h0_all, c0_all, *flat_weights, w_fc_row, b_fc)

    # TODO(synk): lane-dense (B, T) head layout would need an in-kernel
    # (Tb,B)->(B,Tb) relayout; the head output is tiny, so keep time-major.
    out = out_flat.reshape(T, Bp)[:, :B]                # (T, B)
    output = jnp.transpose(out, (1, 0))[..., None]      # (B, T, 1)
    h_n = hT[:, :B, :]
    c_n = cT[:, :B, :]
    return output, (h_n, c_n)


# ----------------------------------------------------------------------------
# Parameter init (deterministic, PyTorch-shaped) and pure-JAX reference
# ----------------------------------------------------------------------------
def init_params(key, input_dim, hidden_dim, num_layers):
    H = hidden_dim
    scale = 1.0 / jnp.sqrt(jnp.float32(H))
    layer_params = []
    for l in range(num_layers):
        in_dim = input_dim if l == 0 else H
        key, k1, k2, k3, k4 = jax.random.split(key, 5)
        w_ih = jax.random.uniform(k1, (4 * H, in_dim), jnp.float32, -scale, scale)
        w_hh = jax.random.uniform(k2, (4 * H, H), jnp.float32, -scale, scale)
        b_ih = jax.random.uniform(k3, (4 * H,), jnp.float32, -scale, scale)
        b_hh = jax.random.uniform(k4, (4 * H,), jnp.float32, -scale, scale)
        # Pre-transpose / fuse biases for the kernel.
        layer_params.append((w_ih.T, w_hh.T, (b_ih + b_hh).reshape(1, 4 * H)))
    key, k5, k6 = jax.random.split(key, 3)
    w_fc = jax.random.uniform(k5, (1, H), jnp.float32, -scale, scale)
    b_fc = jax.random.uniform(k6, (1,), jnp.float32, -scale, scale)
    return layer_params, (w_fc, b_fc.reshape(1, 1))


def pixel_lstm_reference(x, hidden, params):
    """Pure-JAX reference with identical semantics (for validation)."""
    h0_all, c0_all = hidden
    layer_params, (w_fc_row, b_fc) = params
    B, T, _ = x.shape
    layer_in = x
    h_finals, c_finals = [], []
    for l, (w_ih_t, w_hh_t, bias) in enumerate(layer_params):
        H = w_hh_t.shape[0]
        h, c = h0_all[l], c0_all[l]
        ys = []
        for t in range(T):
            gates = layer_in[:, t, :] @ w_ih_t + h @ w_hh_t + bias
            i_g = jax.nn.sigmoid(gates[:, 0 * H:1 * H])
            f_g = jax.nn.sigmoid(gates[:, 1 * H:2 * H])
            g_g = jnp.tanh(gates[:, 2 * H:3 * H])
            o_g = jax.nn.sigmoid(gates[:, 3 * H:4 * H])
            c = f_g * c + i_g * g_g
            h = o_g * jnp.tanh(c)
            ys.append(h)
        layer_in = jnp.stack(ys, axis=1)
        h_finals.append(h)
        c_finals.append(c)
    out = layer_in @ w_fc_row.T + b_fc
    return out, (jnp.stack(h_finals, 0), jnp.stack(c_finals, 0))


# ----------------------------------------------------------------------------
if __name__ == "__main__":
    B, T = 2, 8
    input_dim, hidden_dim, num_layers = 4, 32, 2

    key = jax.random.PRNGKey(0)
    key, kx = jax.random.split(key)
    x = jax.random.normal(kx, (B, T, input_dim), jnp.float32)

    # init_hidden(batch_size): zeros
    h0 = jnp.zeros((num_layers, B, hidden_dim), jnp.float32)
    c0 = jnp.zeros((num_layers, B, hidden_dim), jnp.float32)

    params = init_params(key, input_dim, hidden_dim, num_layers)

    out, (h_n, c_n) = pixel_lstm_forward(x, (h0, c0), params)
    out = jax.block_until_ready(out)
    h_n = jax.block_until_ready(h_n)
    c_n = jax.block_until_ready(c_n)

    # Validate against the pure-JAX reference.
    out_ref, (h_ref, c_ref) = pixel_lstm_reference(x, (h0, c0), params)
    assert out.shape == (B, T, 1)
    assert h_n.shape == (num_layers, B, hidden_dim)
    assert c_n.shape == (num_layers, B, hidden_dim)
    assert jnp.allclose(out, out_ref, atol=1e-3, rtol=1e-3)
    assert jnp.allclose(h_n, h_ref, atol=1e-3, rtol=1e-3)
    assert jnp.allclose(c_n, c_ref, atol=1e-3, rtol=1e-3)

    print("KERNEL_OK")
</pallas_src>

<mosaic_0001>
module attributes {stable_mosaic.version = 11 : i64} {
  func.func @_fused_pixel_lstm_kernel(%arg0: i32, %arg1: memref<64x4xf32, #tpu.memory_space<vmem>>, %arg2: memref<2x8x32xf32, #tpu.memory_space<vmem>>, %arg3: memref<2x8x32xf32, #tpu.memory_space<vmem>>, %arg4: memref<4x128xf32, #tpu.memory_space<vmem>>, %arg5: memref<32x128xf32, #tpu.memory_space<vmem>>, %arg6: memref<1x128xf32, #tpu.memory_space<vmem>>, %arg7: memref<32x128xf32, #tpu.memory_space<vmem>>, %arg8: memref<32x128xf32, #tpu.memory_space<vmem>>, %arg9: memref<1x128xf32, #tpu.memory_space<vmem>>, %arg10: memref<1x32xf32, #tpu.memory_space<vmem>>, %arg11: memref<1x1xf32, #tpu.memory_space<vmem>>, %arg12: memref<64x1xf32, #tpu.memory_space<vmem>>, %arg13: memref<2x8x32xf32, #tpu.memory_space<vmem>>, %arg14: memref<2x8x32xf32, #tpu.memory_space<vmem>>, %arg15: memref<2x8x32xf32, #tpu.memory_space<vmem>>, %arg16: memref<2x8x32xf32, #tpu.memory_space<vmem>>, %arg17: memref<64x128xf32, #tpu.memory_space<vmem>>, %arg18: memref<64x32xf32, #tpu.memory_space<vmem>>) attributes {dimension_semantics = [#tpu.dimension_semantics<arbitrary>], iteration_bounds = array<i64: 1>, scalar_prefetch = 0 : i64, scratch_operands = 4 : i64, tpu.core_type = #tpu.core_type<tc>, window_params = [{transform_indices = @transform_0, window_bounds = array<i64: 64, 4>}, {pipeline_mode = #tpu.pipeline_mode<synchronous>, transform_indices = @transform_1, window_bounds = array<i64: 2, 8, 32>}, {pipeline_mode = #tpu.pipeline_mode<synchronous>, transform_indices = @transform_2, window_bounds = array<i64: 2, 8, 32>}, {pipeline_mode = #tpu.pipeline_mode<synchronous>, transform_indices = @transform_3, window_bounds = array<i64: 4, 128>}, {pipeline_mode = #tpu.pipeline_mode<synchronous>, transform_indices = @transform_4, window_bounds = array<i64: 32, 128>}, {pipeline_mode = #tpu.pipeline_mode<synchronous>, transform_indices = @transform_5, window_bounds = array<i64: 1, 128>}, {pipeline_mode = #tpu.pipeline_mode<synchronous>, transform_indices = @transform_6, window_bounds = array<i64: 32, 128>}, {pipeline_mode = #tpu.pipeline_mode<synchronous>, transform_indices = @transform_7, window_bounds = array<i64: 32, 128>}, {pipeline_mode = #tpu.pipeline_mode<synchronous>, transform_indices = @transform_8, window_bounds = array<i64: 1, 128>}, {pipeline_mode = #tpu.pipeline_mode<synchronous>, transform_indices = @transform_9, window_bounds = array<i64: 1, 32>}, {pipeline_mode = #tpu.pipeline_mode<synchronous>, transform_indices = @transform_10, window_bounds = array<i64: 1, 1>}, {transform_indices = @transform_11, window_bounds = array<i64: 64, 1>}, {pipeline_mode = #tpu.pipeline_mode<synchronous>, transform_indices = @transform_12, window_bounds = array<i64: 2, 8, 32>}, {pipeline_mode = #tpu.pipeline_mode<synchronous>, transform_indices = @transform_13, window_bounds = array<i64: 2, 8, 32>}]} {
    %c0_i32 = arith.constant 0 : i32
    %0 = arith.cmpi eq, %arg0, %c0_i32 : i32
    %1 = arith.extui %0 : i1 to i32
    %c0_i32_0 = arith.constant 0 : i32
    %2 = arith.cmpi ne, %1, %c0_i32_0 : i32
    scf.if %2 {
      %c0_146 = arith.constant 0 : index
      %c0_147 = arith.constant 0 : index
      %c0_148 = arith.constant 0 : index
      %441 = vector.load %arg2[%c0_146, %c0_147, %c0_148] : memref<2x8x32xf32, #tpu.memory_space<vmem>>, vector<2x8x32xf32>
      %c0_149 = arith.constant 0 : index
      %c0_150 = arith.constant 0 : index
      %c0_151 = arith.constant 0 : index
      %442 = vector.load %arg15[%c0_149, %c0_150, %c0_151] : memref<2x8x32xf32, #tpu.memory_space<vmem>>, vector<2x8x32xf32>
      tpu.vector_store %arg15[%c0_149, %c0_150, %c0_151], %441 {strides = array<i32>} : memref<2x8x32xf32, #tpu.memory_space<vmem>>, vector<2x8x32xf32>,
      %c0_152 = arith.constant 0 : index
      %c0_153 = arith.constant 0 : index
      %c0_154 = arith.constant 0 : index
      %443 = vector.load %arg3[%c0_152, %c0_153, %c0_154] : memref<2x8x32xf32, #tpu.memory_space<vmem>>, vector<2x8x32xf32>
      %c0_155 = arith.constant 0 : index
      %c0_156 = arith.constant 0 : index
      %c0_157 = arith.constant 0 : index
      %444 = vector.load %arg16[%c0_155, %c0_156, %c0_157] : memref<2x8x32xf32, #tpu.memory_space<vmem>>, vector<2x8x32xf32>
      tpu.vector_store %arg16[%c0_155, %c0_156, %c0_157], %443 {strides = array<i32>} : memref<2x8x32xf32, #tpu.memory_space<vmem>>, vector<2x8x32xf32>,
    } else {
    }
    %3 = tpu.iota {dimensions = array<i32: 1>} : vector<8x128xi32>
    %c64_i32 = arith.constant 64 : i32
    %4 = vector.broadcast %c64_i32 : i32 to vector<8x128xi32>
    %5 = arith.cmpi sge, %3, %4 : vector<8x128xi32>
    %c96_i32 = arith.constant 96 : i32
    %6 = vector.broadcast %c96_i32 : i32 to vector<8x128xi32>
    %7 = arith.cmpi slt, %3, %6 : vector<8x128xi32>
    %8 = arith.andi %5, %7 : vector<8x128xi1>
    %cst = arith.constant 1.000000e+00 : f32
    %cst_1 = arith.constant 5.000000e-01 : f32
    %9 = vector.broadcast %cst : f32 to vector<8x128xf32>
    %10 = vector.broadcast %cst_1 : f32 to vector<8x128xf32>
    %11 = arith.select %8, %9, %10 : vector<8x128xi1>, vector<8x128xf32>
    %cst_2 = arith.constant 0.000000e+00 : f32
    %cst_3 = arith.constant 5.000000e-01 : f32
    %12 = vector.broadcast %cst_2 : f32 to vector<8x128xf32>
    %13 = vector.broadcast %cst_3 : f32 to vector<8x128xf32>
    %14 = arith.select %8, %12, %13 : vector<8x128xi1>, vector<8x128xf32>
    %c0 = arith.constant 0 : index
    %c0_4 = arith.constant 0 : index
    %15 = vector.load %arg10[%c0, %c0_4] : memref<1x32xf32, #tpu.memory_space<vmem>>, vector<1x32xf32>
    %c0_5 = arith.constant 0 : index
    %c0_6 = arith.constant 0 : index
    %16 = vector.load %arg11[%c0_5, %c0_6] : memref<1x1xf32, #tpu.memory_space<vmem>>, vector<1x1xf32>
    %c0_7 = arith.constant 0 : index
    %c0_8 = arith.constant 0 : index
    %17 = vector.load %arg4[%c0_7, %c0_8] : memref<4x128xf32, #tpu.memory_space<vmem>>, vector<4x128xf32>
    %c0_9 = arith.constant 0 : index
    %c0_10 = arith.constant 0 : index
    %18 = vector.load %arg5[%c0_9, %c0_10] : memref<32x128xf32, #tpu.memory_space<vmem>>, vector<32x128xf32>
    %c0_11 = arith.constant 0 : index
    %c0_12 = arith.constant 0 : index
    %19 = vector.load %arg6[%c0_11, %c0_12] : memref<1x128xf32, #tpu.memory_space<vmem>>, vector<1x128xf32>
    %c0_13 = arith.constant 0 : index
    %c0_14 = arith.constant 0 : index
    %20 = vector.load %arg1[%c0_13, %c0_14] : memref<64x4xf32, #tpu.memory_space<vmem>>, vector<64x4xf32>
    %cst_15 = arith.constant dense<0.000000e+00> : vector<64x128xf32>
    %21 = tpu.matmul %20, %17, %cst_15 {dimension_numbers = #tpu.dot_dimension_numbers<[1], [0], [0], [1], [0, 0, 1, 1], [], []>} : vector<64x4xf32>, vector<4x128xf32>, vector<64x128xf32> -> vector<64x128xf32>
    %22 = vector.broadcast %19 : vector<1x128xf32> to vector<64x128xf32>
    %23 = arith.addf %21, %22 : vector<64x128xf32>
    %c0_16 = arith.constant 0 : index
    %c0_17 = arith.constant 0 : index
    %24 = vector.load %arg17[%c0_16, %c0_17] : memref<64x128xf32, #tpu.memory_space<vmem>>, vector<64x128xf32>
    tpu.vector_store %arg17[%c0_16, %c0_17], %23 {strides = array<i32>} : memref<64x128xf32, #tpu.memory_space<vmem>>, vector<64x128xf32>,
    %c0_18 = arith.constant 0 : index
    %c0_19 = arith.constant 0 : index
    %c0_20 = arith.constant 0 : index
    %25 = vector.load %arg15[%c0_18, %c0_19, %c0_20] : memref<2x8x32xf32, #tpu.memory_space<vmem>>, vector<1x8x32xf32>
    %26 = vector.shape_cast %25 : vector<1x8x32xf32> to vector<8x32xf32>
    %c0_21 = arith.constant 0 : index
    %c0_22 = arith.constant 0 : index
    %c0_23 = arith.constant 0 : index
    %27 = vector.load %arg16[%c0_21, %c0_22, %c0_23] : memref<2x8x32xf32, #tpu.memory_space<vmem>>, vector<1x8x32xf32>
    %28 = vector.shape_cast %27 : vector<1x8x32xf32> to vector<8x32xf32>
    %c0_i32_24 = arith.constant 0 : i32
    %c8_i32 = arith.constant 8 : i32
    %29 = arith.muli %c0_i32_24, %c8_i32 : i32
    %30 = tpu.assume_multiple %29, 8 : i32
    %31 = arith.index_cast %30 : i32 to index
    %c0_25 = arith.constant 0 : index
    %32 = vector.load %arg17[%31, %c0_25] : memref<64x128xf32, #tpu.memory_space<vmem>>, vector<8x128xf32>
    %cst_26 = arith.constant dense<0.000000e+00> : vector<8x128xf32>
    %33 = tpu.matmul %26, %18, %cst_26 {dimension_numbers = #tpu.dot_dimension_numbers<[1], [0], [0], [1], [0, 0, 1, 1], [], []>} : vector<8x32xf32>, vector<32x128xf32>, vector<8x128xf32> -> vector<8x128xf32>
    %34 = arith.addf %32, %33 : vector<8x128xf32>
    %35 = arith.mulf %34, %11 : vector<8x128xf32>
    %36 = math.tanh %35 : vector<8x128xf32>
    %37 = arith.mulf %36, %11 : vector<8x128xf32>
    %38 = arith.addf %37, %14 : vector<8x128xf32>
    %39 = vector.extract_strided_slice %38 {offsets = [0, 0], sizes = [8, 32], strides = [1, 1]} : vector<8x128xf32> to vector<8x32xf32>
    %40 = vector.extract_strided_slice %38 {offsets = [0, 32], sizes = [8, 32], strides = [1, 1]} : vector<8x128xf32> to vector<8x32xf32>
    %41 = vector.extract_strided_slice %38 {offsets = [0, 64], sizes = [8, 32], strides = [1, 1]} : vector<8x128xf32> to vector<8x32xf32>
    %42 = vector.extract_strided_slice %38 {offsets = [0, 96], sizes = [8, 32], strides = [1, 1]} : vector<8x128xf32> to vector<8x32xf32>
    %43 = arith.mulf %40, %28 : vector<8x32xf32>
    %44 = arith.mulf %39, %41 : vector<8x32xf32>
    %45 = arith.addf %43, %44 : vector<8x32xf32>
    %46 = math.tanh %45 : vector<8x32xf32>
    %47 = arith.mulf %42, %46 : vector<8x32xf32>
    %48 = arith.index_cast %30 : i32 to index
    %c0_27 = arith.constant 0 : index
    %49 = vector.load %arg18[%48, %c0_27] : memref<64x32xf32, #tpu.memory_space<vmem>>, vector<8x32xf32>
    tpu.vector_store %arg18[%48, %c0_27], %47 {strides = array<i32>} : memref<64x32xf32, #tpu.memory_space<vmem>>, vector<8x32xf32>,
    %c1_i32 = arith.constant 1 : i32
    %c8_i32_28 = arith.constant 8 : i32
    %50 = arith.muli %c1_i32, %c8_i32_28 : i32
    %51 = tpu.assume_multiple %50, 8 : i32
    %52 = arith.index_cast %51 : i32 to index
    %c0_29 = arith.constant 0 : index
    %53 = vector.load %arg17[%52, %c0_29] : memref<64x128xf32, #tpu.memory_space<vmem>>, vector<8x128xf32>
    %cst_30 = arith.constant dense<0.000000e+00> : vector<8x128xf32>
    %54 = tpu.matmul %47, %18, %cst_30 {dimension_numbers = #tpu.dot_dimension_numbers<[1], [0], [0], [1], [0, 0, 1, 1], [], []>} : vector<8x32xf32>, vector<32x128xf32>, vector<8x128xf32> -> vector<8x128xf32>
    %55 = arith.addf %53, %54 : vector<8x128xf32>
    %56 = arith.mulf %55, %11 : vector<8x128xf32>
    %57 = math.tanh %56 : vector<8x128xf32>
    %58 = arith.mulf %57, %11 : vector<8x128xf32>
    %59 = arith.addf %58, %14 : vector<8x128xf32>
    %60 = vector.extract_strided_slice %59 {offsets = [0, 0], sizes = [8, 32], strides = [1, 1]} : vector<8x128xf32> to vector<8x32xf32>
    %61 = vector.extract_strided_slice %59 {offsets = [0, 32], sizes = [8, 32], strides = [1, 1]} : vector<8x128xf32> to vector<8x32xf32>
    %62 = vector.extract_strided_slice %59 {offsets = [0, 64], sizes = [8, 32], strides = [1, 1]} : vector<8x128xf32> to vector<8x32xf32>
    %63 = vector.extract_strided_slice %59 {offsets = [0, 96], sizes = [8, 32], strides = [1, 1]} : vector<8x128xf32> to vector<8x32xf32>
    %64 = arith.mulf %61, %45 : vector<8x32xf32>
    %65 = arith.mulf %60, %62 : vector<8x32xf32>
    %66 = arith.addf %64, %65 : vector<8x32xf32>
    %67 = math.tanh %66 : vector<8x32xf32>
    %68 = arith.mulf %63, %67 : vector<8x32xf32>
    %69 = arith.index_cast %51 : i32 to index
    %c0_31 = arith.constant 0 : index
    %70 = vector.load %arg18[%69, %c0_31] : memref<64x32xf32, #tpu.memory_space<vmem>>, vector<8x32xf32>
    tpu.vector_store %arg18[%69, %c0_31], %68 {strides = array<i32>} : memref<64x32xf32, #tpu.memory_space<vmem>>, vector<8x32xf32>,
    %c2_i32 = arith.constant 2 : i32
    %c8_i32_32 = arith.constant 8 : i32
    %71 = arith.muli %c2_i32, %c8_i32_32 : i32
    %72 = tpu.assume_multiple %71, 8 : i32
    %73 = arith.index_cast %72 : i32 to index
    %c0_33 = arith.constant 0 : index
    %74 = vector.load %arg17[%73, %c0_33] : memref<64x128xf32, #tpu.memory_space<vmem>>, vector<8x128xf32>
    %cst_34 = arith.constant dense<0.000000e+00> : vector<8x128xf32>
    %75 = tpu.matmul %68, %18, %cst_34 {dimension_numbers = #tpu.dot_dimension_numbers<[1], [0], [0], [1], [0, 0, 1, 1], [], []>} : vector<8x32xf32>, vector<32x128xf32>, vector<8x128xf32> -> vector<8x128xf32>
    %76 = arith.addf %74, %75 : vector<8x128xf32>
    %77 = arith.mulf %76, %11 : vector<8x128xf32>
    %78 = math.tanh %77 : vector<8x128xf32>
    %79 = arith.mulf %78, %11 : vector<8x128xf32>
    %80 = arith.addf %79, %14 : vector<8x128xf32>
    %81 = vector.extract_strided_slice %80 {offsets = [0, 0], sizes = [8, 32], strides = [1, 1]} : vector<8x128xf32> to vector<8x32xf32>
    %82 = vector.extract_strided_slice %80 {offsets = [0, 32], sizes = [8, 32], strides = [1, 1]} : vector<8x128xf32> to vector<8x32xf32>
    %83 = vector.extract_strided_slice %80 {offsets = [0, 64], sizes = [8, 32], strides = [1, 1]} : vector<8x128xf32> to vector<8x32xf32>
    %84 = vector.extract_strided_slice %80 {offsets = [0, 96], sizes = [8, 32], strides = [1, 1]} : vector<8x128xf32> to vector<8x32xf32>
    %85 = arith.mulf %82, %66 : vector<8x32xf32>
    %86 = arith.mulf %81, %83 : vector<8x32xf32>
    %87 = arith.addf %85, %86 : vector<8x32xf32>
    %88 = math.tanh %87 : vector<8x32xf32>
    %89 = arith.mulf %84, %88 : vector<8x32xf32>
    %90 = arith.index_cast %72 : i32 to index
    %c0_35 = arith.constant 0 : index
    %91 = vector.load %arg18[%90, %c0_35] : memref<64x32xf32, #tpu.memory_space<vmem>>, vector<8x32xf32>
    tpu.vector_store %arg18[%90, %c0_35], %89 {strides = array<i32>} : memref<64x32xf32, #tpu.memory_space<vmem>>, vector<8x32xf32>,
    %c3_i32 = arith.constant 3 : i32
    %c8_i32_36 = arith.constant 8 : i32
    %92 = arith.muli %c3_i32, %c8_i32_36 : i32
    %93 = tpu.assume_multiple %92, 8 : i32
    %94 = arith.index_cast %93 : i32 to index
    %c0_37 = arith.constant 0 : index
    %95 = vector.load %arg17[%94, %c0_37] : memref<64x128xf32, #tpu.memory_space<vmem>>, vector<8x128xf32>
    %cst_38 = arith.constant dense<0.000000e+00> : vector<8x128xf32>
    %96 = tpu.matmul %89, %18, %cst_38 {dimension_numbers = #tpu.dot_dimension_numbers<[1], [0], [0], [1], [0, 0, 1, 1], [], []>} : vector<8x32xf32>, vector<32x128xf32>, vector<8x128xf32> -> vector<8x128xf32>
    %97 = arith.addf %95, %96 : vector<8x128xf32>
    %98 = arith.mulf %97, %11 : vector<8x128xf32>
    %99 = math.tanh %98 : vector<8x128xf32>
    %100 = arith.mulf %99, %11 : vector<8x128xf32>
    %101 = arith.addf %100, %14 : vector<8x128xf32>
    %102 = vector.extract_strided_slice %101 {offsets = [0, 0], sizes = [8, 32], strides = [1, 1]} : vector<8x128xf32> to vector<8x32xf32>
    %103 = vector.extract_strided_slice %101 {offsets = [0, 32], sizes = [8, 32], strides = [1, 1]} : vector<8x128xf32> to vector<8x32xf32>
    %104 = vector.extract_strided_slice %101 {offsets = [0, 64], sizes = [8, 32], strides = [1, 1]} : vector<8x128xf32> to vector<8x32xf32>
    %105 = vector.extract_strided_slice %101 {offsets = [0, 96], sizes = [8, 32], strides = [1, 1]} : vector<8x128xf32> to vector<8x32xf32>
    %106 = arith.mulf %103, %87 : vector<8x32xf32>
    %107 = arith.mulf %102, %104 : vector<8x32xf32>
    %108 = arith.addf %106, %107 : vector<8x32xf32>
    %109 = math.tanh %108 : vector<8x32xf32>
    %110 = arith.mulf %105, %109 : vector<8x32xf32>
    %111 = arith.index_cast %93 : i32 to index
    %c0_39 = arith.constant 0 : index
    %112 = vector.load %arg18[%111, %c0_39] : memref<64x32xf32, #tpu.memory_space<vmem>>, vector<8x32xf32>
    tpu.vector_store %arg18[%111, %c0_39], %110 {strides = array<i32>} : memref<64x32xf32, #tpu.memory_space<vmem>>, vector<8x32xf32>,
    %c4_i32 = arith.constant 4 : i32
    %c8_i32_40 = arith.constant 8 : i32
    %113 = arith.muli %c4_i32, %c8_i32_40 : i32
    %114 = tpu.assume_multiple %113, 8 : i32
    %115 = arith.index_cast %114 : i32 to index
    %c0_41 = arith.constant 0 : index
    %116 = vector.load %arg17[%115, %c0_41] : memref<64x128xf32, #tpu.memory_space<vmem>>, vector<8x128xf32>
    %cst_42 = arith.constant dense<0.000000e+00> : vector<8x128xf32>
    %117 = tpu.matmul %110, %18, %cst_42 {dimension_numbers = #tpu.dot_dimension_numbers<[1], [0], [0], [1], [0, 0, 1, 1], [], []>} : vector<8x32xf32>, vector<32x128xf32>, vector<8x128xf32> -> vector<8x128xf32>
    %118 = arith.addf %116, %117 : vector<8x128xf32>
    %119 = arith.mulf %118, %11 : vector<8x128xf32>
    %120 = math.tanh %119 : vector<8x128xf32>
    %121 = arith.mulf %120, %11 : vector<8x128xf32>
    %122 = arith.addf %121, %14 : vector<8x128xf32>
    %123 = vector.extract_strided_slice %122 {offsets = [0, 0], sizes = [8, 32], strides = [1, 1]} : vector<8x128xf32> to vector<8x32xf32>
    %124 = vector.extract_strided_slice %122 {offsets = [0, 32], sizes = [8, 32], strides = [1, 1]} : vector<8x128xf32> to vector<8x32xf32>
    %125 = vector.extract_strided_slice %122 {offsets = [0, 64], sizes = [8, 32], strides = [1, 1]} : vector<8x128xf32> to vector<8x32xf32>
    %126 = vector.extract_strided_slice %122 {offsets = [0, 96], sizes = [8, 32], strides = [1, 1]} : vector<8x128xf32> to vector<8x32xf32>
    %127 = arith.mulf %124, %108 : vector<8x32xf32>
    %128 = arith.mulf %123, %125 : vector<8x32xf32>
    %129 = arith.addf %127, %128 : vector<8x32xf32>
    %130 = math.tanh %129 : vector<8x32xf32>
    %131 = arith.mulf %126, %130 : vector<8x32xf32>
    %132 = arith.index_cast %114 : i32 to index
    %c0_43 = arith.constant 0 : index
    %133 = vector.load %arg18[%132, %c0_43] : memref<64x32xf32, #tpu.memory_space<vmem>>, vector<8x32xf32>
    tpu.vector_store %arg18[%132, %c0_43], %131 {strides = array<i32>} : memref<64x32xf32, #tpu.memory_space<vmem>>, vector<8x32xf32>,
    %c5_i32 = arith.constant 5 : i32
    %c8_i32_44 = arith.constant 8 : i32
    %134 = arith.muli %c5_i32, %c8_i32_44 : i32
    %135 = tpu.assume_multiple %134, 8 : i32
    %136 = arith.index_cast %135 : i32 to index
    %c0_45 = arith.constant 0 : index
    %137 = vector.load %arg17[%136, %c0_45] : memref<64x128xf32, #tpu.memory_space<vmem>>, vector<8x128xf32>
    %cst_46 = arith.constant dense<0.000000e+00> : vector<8x128xf32>
    %138 = tpu.matmul %131, %18, %cst_46 {dimension_numbers = #tpu.dot_dimension_numbers<[1], [0], [0], [1], [0, 0, 1, 1], [], []>} : vector<8x32xf32>, vector<32x128xf32>, vector<8x128xf32> -> vector<8x128xf32>
    %139 = arith.addf %137, %138 : vector<8x128xf32>
    %140 = arith.mulf %139, %11 : vector<8x128xf32>
    %141 = math.tanh %140 : vector<8x128xf32>
    %142 = arith.mulf %141, %11 : vector<8x128xf32>
    %143 = arith.addf %142, %14 : vector<8x128xf32>
    %144 = vector.extract_strided_slice %143 {offsets = [0, 0], sizes = [8, 32], strides = [1, 1]} : vector<8x128xf32> to vector<8x32xf32>
    %145 = vector.extract_strided_slice %143 {offsets = [0, 32], sizes = [8, 32], strides = [1, 1]} : vector<8x128xf32> to vector<8x32xf32>
    %146 = vector.extract_strided_slice %143 {offsets = [0, 64], sizes = [8, 32], strides = [1, 1]} : vector<8x128xf32> to vector<8x32xf32>
    %147 = vector.extract_strided_slice %143 {offsets = [0, 96], sizes = [8, 32], strides = [1, 1]} : vector<8x128xf32> to vector<8x32xf32>
    %148 = arith.mulf %145, %129 : vector<8x32xf32>
    %149 = arith.mulf %144, %146 : vector<8x32xf32>
    %150 = arith.addf %148, %149 : vector<8x32xf32>
    %151 = math.tanh %150 : vector<8x32xf32>
    %152 = arith.mulf %147, %151 : vector<8x32xf32>
    %153 = arith.index_cast %135 : i32 to index
    %c0_47 = arith.constant 0 : index
    %154 = vector.load %arg18[%153, %c0_47] : memref<64x32xf32, #tpu.memory_space<vmem>>, vector<8x32xf32>
    tpu.vector_store %arg18[%153, %c0_47], %152 {strides = array<i32>} : memref<64x32xf32, #tpu.memory_space<vmem>>, vector<8x32xf32>,
    %c6_i32 = arith.constant 6 : i32
    %c8_i32_48 = arith.constant 8 : i32
    %155 = arith.muli %c6_i32, %c8_i32_48 : i32
    %156 = tpu.assume_multiple %155, 8 : i32
    %157 = arith.index_cast %156 : i32 to index
    %c0_49 = arith.constant 0 : index
    %158 = vector.load %arg17[%157, %c0_49] : memref<64x128xf32, #tpu.memory_space<vmem>>, vector<8x128xf32>
    %cst_50 = arith.constant dense<0.000000e+00> : vector<8x128xf32>
    %159 = tpu.matmul %152, %18, %cst_50 {dimension_numbers = #tpu.dot_dimension_numbers<[1], [0], [0], [1], [0, 0, 1, 1], [], []>} : vector<8x32xf32>, vector<32x128xf32>, vector<8x128xf32> -> vector<8x128xf32>
    %160 = arith.addf %158, %159 : vector<8x128xf32>
    %161 = arith.mulf %160, %11 : vector<8x128xf32>
    %162 = math.tanh %161 : vector<8x128xf32>
    %163 = arith.mulf %162, %11 : vector<8x128xf32>
    %164 = arith.addf %163, %14 : vector<8x128xf32>
    %165 = vector.extract_strided_slice %164 {offsets = [0, 0], sizes = [8, 32], strides = [1, 1]} : vector<8x128xf32> to vector<8x32xf32>
    %166 = vector.extract_strided_slice %164 {offsets = [0, 32], sizes = [8, 32], strides = [1, 1]} : vector<8x128xf32> to vector<8x32xf32>
    %167 = vector.extract_strided_slice %164 {offsets = [0, 64], sizes = [8, 32], strides = [1, 1]} : vector<8x128xf32> to vector<8x32xf32>
    %168 = vector.extract_strided_slice %164 {offsets = [0, 96], sizes = [8, 32], strides = [1, 1]} : vector<8x128xf32> to vector<8x32xf32>
    %169 = arith.mulf %166, %150 : vector<8x32xf32>
    %170 = arith.mulf %165, %167 : vector<8x32xf32>
    %171 = arith.addf %169, %170 : vector<8x32xf32>
    %172 = math.tanh %171 : vector<8x32xf32>
    %173 = arith.mulf %168, %172 : vector<8x32xf32>
    %174 = arith.index_cast %156 : i32 to index
    %c0_51 = arith.constant 0 : index
    %175 = vector.load %arg18[%174, %c0_51] : memref<64x32xf32, #tpu.memory_space<vmem>>, vector<8x32xf32>
    tpu.vector_store %arg18[%174, %c0_51], %173 {strides = array<i32>} : memref<64x32xf32, #tpu.memory_space<vmem>>, vector<8x32xf32>,
    %c7_i32 = arith.constant 7 : i32
    %c8_i32_52 = arith.constant 8 : i32
    %176 = arith.muli %c7_i32, %c8_i32_52 : i32
    %177 = tpu.assume_multiple %176, 8 : i32
    %178 = arith.index_cast %177 : i32 to index
    %c0_53 = arith.constant 0 : index
    %179 = vector.load %arg17[%178, %c0_53] : memref<64x128xf32, #tpu.memory_space<vmem>>, vector<8x128xf32>
    %cst_54 = arith.constant dense<0.000000e+00> : vector<8x128xf32>
    %180 = tpu.matmul %173, %18, %cst_54 {dimension_numbers = #tpu.dot_dimension_numbers<[1], [0], [0], [1], [0, 0, 1, 1], [], []>} : vector<8x32xf32>, vector<32x128xf32>, vector<8x128xf32> -> vector<8x128xf32>
    %181 = arith.addf %179, %180 : vector<8x128xf32>
    %182 = arith.mulf %181, %11 : vector<8x128xf32>
    %183 = math.tanh %182 : vector<8x128xf32>
    %184 = arith.mulf %183, %11 : vector<8x128xf32>
    %185 = arith.addf %184, %14 : vector<8x128xf32>
    %186 = vector.extract_strided_slice %185 {offsets = [0, 0], sizes = [8, 32], strides = [1, 1]} : vector<8x128xf32> to vector<8x32xf32>
    %187 = vector.extract_strided_slice %185 {offsets = [0, 32], sizes = [8, 32], strides = [1, 1]} : vector<8x128xf32> to vector<8x32xf32>
    %188 = vector.extract_strided_slice %185 {offsets = [0, 64], sizes = [8, 32], strides = [1, 1]} : vector<8x128xf32> to vector<8x32xf32>
    %189 = vector.extract_strided_slice %185 {offsets = [0, 96], sizes = [8, 32], strides = [1, 1]} : vector<8x128xf32> to vector<8x32xf32>
    %190 = arith.mulf %187, %171 : vector<8x32xf32>
    %191 = arith.mulf %186, %188 : vector<8x32xf32>
    %192 = arith.addf %190, %191 : vector<8x32xf32>
    %193 = math.tanh %192 : vector<8x32xf32>
    %194 = arith.mulf %189, %193 : vector<8x32xf32>
    %195 = arith.index_cast %177 : i32 to index
    %c0_55 = arith.constant 0 : index
    %196 = vector.load %arg18[%195, %c0_55] : memref<64x32xf32, #tpu.memory_space<vmem>>, vector<8x32xf32>
    tpu.vector_store %arg18[%195, %c0_55], %194 {strides = array<i32>} : memref<64x32xf32, #tpu.memory_space<vmem>>, vector<8x32xf32>,
    %c8_i32_56 = arith.constant 8 : i32
    %c0_57 = arith.constant 0 : index
    %c0_58 = arith.constant 0 : index
    %c0_59 = arith.constant 0 : index
    %197 = vector.load %arg15[%c0_57, %c0_58, %c0_59] : memref<2x8x32xf32, #tpu.memory_space<vmem>>, vector<1x8x32xf32>
    %198 = vector.shape_cast %197 : vector<1x8x32xf32> to vector<8x32xf32>
    %199 = vector.shape_cast %194 : vector<8x32xf32> to vector<1x8x32xf32>
    tpu.vector_store %arg15[%c0_57, %c0_58, %c0_59], %199 {strides = array<i32>} : memref<2x8x32xf32, #tpu.memory_space<vmem>>, vector<1x8x32xf32>,
    %c0_60 = arith.constant 0 : index
    %c0_61 = arith.constant 0 : index
    %c0_62 = arith.constant 0 : index
    %200 = vector.load %arg16[%c0_60, %c0_61, %c0_62] : memref<2x8x32xf32, #tpu.memory_space<vmem>>, vector<1x8x32xf32>
    %201 = vector.shape_cast %200 : vector<1x8x32xf32> to vector<8x32xf32>
    %202 = vector.shape_cast %192 : vector<8x32xf32> to vector<1x8x32xf32>
    tpu.vector_store %arg16[%c0_60, %c0_61, %c0_62], %202 {strides = array<i32>} : memref<2x8x32xf32, #tpu.memory_space<vmem>>, vector<1x8x32xf32>,
    %c0_63 = arith.constant 0 : index
    %c0_64 = arith.constant 0 : index
    %203 = vector.load %arg7[%c0_63, %c0_64] : memref<32x128xf32, #tpu.memory_space<vmem>>, vector<32x128xf32>
    %c0_65 = arith.constant 0 : index
    %c0_66 = arith.constant 0 : index
    %204 = vector.load %arg8[%c0_65, %c0_66] : memref<32x128xf32, #tpu.memory_space<vmem>>, vector<32x128xf32>
    %c0_67 = arith.constant 0 : index
    %c0_68 = arith.constant 0 : index
    %205 = vector.load %arg9[%c0_67, %c0_68] : memref<1x128xf32, #tpu.memory_space<vmem>>, vector<1x128xf32>
    %c0_69 = arith.constant 0 : index
    %c0_70 = arith.constant 0 : index
    %206 = vector.load %arg18[%c0_69, %c0_70] : memref<64x32xf32, #tpu.memory_space<vmem>>, vector<64x32xf32>
    %cst_71 = arith.constant dense<0.000000e+00> : vector<64x128xf32>
    %207 = tpu.matmul %206, %203, %cst_71 {dimension_numbers = #tpu.dot_dimension_numbers<[1], [0], [0], [1], [0, 0, 1, 1], [], []>} : vector<64x32xf32>, vector<32x128xf32>, vector<64x128xf32> -> vector<64x128xf32>
    %208 = vector.broadcast %205 : vector<1x128xf32> to vector<64x128xf32>
    %209 = arith.addf %207, %208 : vector<64x128xf32>
    %c0_72 = arith.constant 0 : index
    %c0_73 = arith.constant 0 : index
    %210 = vector.load %arg17[%c0_72, %c0_73] : memref<64x128xf32, #tpu.memory_space<vmem>>, vector<64x128xf32>
    tpu.vector_store %arg17[%c0_72, %c0_73], %209 {strides = array<i32>} : memref<64x128xf32, #tpu.memory_space<vmem>>, vector<64x128xf32>,
    %c1 = arith.constant 1 : index
    %c0_74 = arith.constant 0 : index
    %c0_75 = arith.constant 0 : index
    %211 = vector.load %arg15[%c1, %c0_74, %c0_75] : memref<2x8x32xf32, #tpu.memory_space<vmem>>, vector<1x8x32xf32>
    %212 = vector.shape_cast %211 : vector<1x8x32xf32> to vector<8x32xf32>
    %c1_76 = arith.constant 1 : index
    %c0_77 = arith.constant 0 : index
    %c0_78 = arith.constant 0 : index
    %213 = vector.load %arg16[%c1_76, %c0_77, %c0_78] : memref<2x8x32xf32, #tpu.memory_space<vmem>>, vector<1x8x32xf32>
    %214 = vector.shape_cast %213 : vector<1x8x32xf32> to vector<8x32xf32>
    %c0_i32_79 = arith.constant 0 : i32
    %c8_i32_80 = arith.constant 8 : i32
    %215 = arith.muli %c0_i32_79, %c8_i32_80 : i32
    %216 = tpu.assume_multiple %215, 8 : i32
    %217 = arith.index_cast %216 : i32 to index
    %c0_81 = arith.constant 0 : index
    %218 = vector.load %arg17[%217, %c0_81] : memref<64x128xf32, #tpu.memory_space<vmem>>, vector<8x128xf32>
    %cst_82 = arith.constant dense<0.000000e+00> : vector<8x128xf32>
    %219 = tpu.matmul %212, %204, %cst_82 {dimension_numbers = #tpu.dot_dimension_numbers<[1], [0], [0], [1], [0, 0, 1, 1], [], []>} : vector<8x32xf32>, vector<32x128xf32>, vector<8x128xf32> -> vector<8x128xf32>
    %220 = arith.addf %218, %219 : vector<8x128xf32>
    %221 = arith.mulf %220, %11 : vector<8x128xf32>
    %222 = math.tanh %221 : vector<8x128xf32>
    %223 = arith.mulf %222, %11 : vector<8x128xf32>
    %224 = arith.addf %223, %14 : vector<8x128xf32>
    %225 = vector.extract_strided_slice %224 {offsets = [0, 0], sizes = [8, 32], strides = [1, 1]} : vector<8x128xf32> to vector<8x32xf32>
    %226 = vector.extract_strided_slice %224 {offsets = [0, 32], sizes = [8, 32], strides = [1, 1]} : vector<8x128xf32> to vector<8x32xf32>
    %227 = vector.extract_strided_slice %224 {offsets = [0, 64], sizes = [8, 32], strides = [1, 1]} : vector<8x128xf32> to vector<8x32xf32>
    %228 = vector.extract_strided_slice %224 {offsets = [0, 96], sizes = [8, 32], strides = [1, 1]} : vector<8x128xf32> to vector<8x32xf32>
    %229 = arith.mulf %226, %214 : vector<8x32xf32>
    %230 = arith.mulf %225, %227 : vector<8x32xf32>
    %231 = arith.addf %229, %230 : vector<8x32xf32>
    %232 = math.tanh %231 : vector<8x32xf32>
    %233 = arith.mulf %228, %232 : vector<8x32xf32>
    %234 = vector.broadcast %15 : vector<1x32xf32> to vector<8x32xf32>
    %235 = arith.mulf %233, %234 : vector<8x32xf32>
    %cst_83 = arith.constant dense<0.000000e+00> : vector<8xf32>
    %236 = vector.multi_reduction <add>, %235, %cst_83 [1] : vector<8x32xf32> to vector<8xf32>
    %237 = vector.shape_cast %236 : vector<8xf32> to vector<8x1xf32>
    %238 = vector.broadcast %16 : vector<1x1xf32> to vector<8x1xf32>
    %239 = arith.addf %237, %238 : vector<8x1xf32>
    %240 = arith.index_cast %216 : i32 to index
    %c0_84 = arith.constant 0 : index
    %241 = vector.load %arg12[%240, %c0_84] : memref<64x1xf32, #tpu.memory_space<vmem>>, vector<8x1xf32>
    tpu.vector_store %arg12[%240, %c0_84], %239 {strides = array<i32>} : memref<64x1xf32, #tpu.memory_space<vmem>>, vector<8x1xf32>,
    %c1_i32_85 = arith.constant 1 : i32
    %c8_i32_86 = arith.constant 8 : i32
    %242 = arith.muli %c1_i32_85, %c8_i32_86 : i32
    %243 = tpu.assume_multiple %242, 8 : i32
    %244 = arith.index_cast %243 : i32 to index
    %c0_87 = arith.constant 0 : index
    %245 = vector.load %arg17[%244, %c0_87] : memref<64x128xf32, #tpu.memory_space<vmem>>, vector<8x128xf32>
    %cst_88 = arith.constant dense<0.000000e+00> : vector<8x128xf32>
    %246 = tpu.matmul %233, %204, %cst_88 {dimension_numbers = #tpu.dot_dimension_numbers<[1], [0], [0], [1], [0, 0, 1, 1], [], []>} : vector<8x32xf32>, vector<32x128xf32>, vector<8x128xf32> -> vector<8x128xf32>
    %247 = arith.addf %245, %246 : vector<8x128xf32>
    %248 = arith.mulf %247, %11 : vector<8x128xf32>
    %249 = math.tanh %248 : vector<8x128xf32>
    %250 = arith.mulf %249, %11 : vector<8x128xf32>
    %251 = arith.addf %250, %14 : vector<8x128xf32>
    %252 = vector.extract_strided_slice %251 {offsets = [0, 0], sizes = [8, 32], strides = [1, 1]} : vector<8x128xf32> to vector<8x32xf32>
    %253 = vector.extract_strided_slice %251 {offsets = [0, 32], sizes = [8, 32], strides = [1, 1]} : vector<8x128xf32> to vector<8x32xf32>
    %254 = vector.extract_strided_slice %251 {offsets = [0, 64], sizes = [8, 32], strides = [1, 1]} : vector<8x128xf32> to vector<8x32xf32>
    %255 = vector.extract_strided_slice %251 {offsets = [0, 96], sizes = [8, 32], strides = [1, 1]} : vector<8x128xf32> to vector<8x32xf32>
    %256 = arith.mulf %253, %231 : vector<8x32xf32>
    %257 = arith.mulf %252, %254 : vector<8x32xf32>
    %258 = arith.addf %256, %257 : vector<8x32xf32>
    %259 = math.tanh %258 : vector<8x32xf32>
    %260 = arith.mulf %255, %259 : vector<8x32xf32>
    %261 = vector.broadcast %15 : vector<1x32xf32> to vector<8x32xf32>
    %262 = arith.mulf %260, %261 : vector<8x32xf32>
    %cst_89 = arith.constant dense<0.000000e+00> : vector<8xf32>
    %263 = vector.multi_reduction <add>, %262, %cst_89 [1] : vector<8x32xf32> to vector<8xf32>
    %264 = vector.shape_cast %263 : vector<8xf32> to vector<8x1xf32>
    %265 = vector.broadcast %16 : vector<1x1xf32> to vector<8x1xf32>
    %266 = arith.addf %264, %265 : vector<8x1xf32>
    %267 = arith.index_cast %243 : i32 to index
    %c0_90 = arith.constant 0 : index
    %268 = vector.load %arg12[%267, %c0_90] : memref<64x1xf32, #tpu.memory_space<vmem>>, vector<8x1xf32>
    tpu.vector_store %arg12[%267, %c0_90], %266 {strides = array<i32>} : memref<64x1xf32, #tpu.memory_space<vmem>>, vector<8x1xf32>,
    %c2_i32_91 = arith.constant 2 : i32
    %c8_i32_92 = arith.constant 8 : i32
    %269 = arith.muli %c2_i32_91, %c8_i32_92 : i32
    %270 = tpu.assume_multiple %269, 8 : i32
    %271 = arith.index_cast %270 : i32 to index
    %c0_93 = arith.constant 0 : index
    %272 = vector.load %arg17[%271, %c0_93] : memref<64x128xf32, #tpu.memory_space<vmem>>, vector<8x128xf32>
    %cst_94 = arith.constant dense<0.000000e+00> : vector<8x128xf32>
    %273 = tpu.matmul %260, %204, %cst_94 {dimension_numbers = #tpu.dot_dimension_numbers<[1], [0], [0], [1], [0, 0, 1, 1], [], []>} : vector<8x32xf32>, vector<32x128xf32>, vector<8x128xf32> -> vector<8x128xf32>
    %274 = arith.addf %272, %273 : vector<8x128xf32>
    %275 = arith.mulf %274, %11 : vector<8x128xf32>
    %276 = math.tanh %275 : vector<8x128xf32>
    %277 = arith.mulf %276, %11 : vector<8x128xf32>
    %278 = arith.addf %277, %14 : vector<8x128xf32>
    %279 = vector.extract_strided_slice %278 {offsets = [0, 0], sizes = [8, 32], strides = [1, 1]} : vector<8x128xf32> to vector<8x32xf32>
    %280 = vector.extract_strided_slice %278 {offsets = [0, 32], sizes = [8, 32], strides = [1, 1]} : vector<8x128xf32> to vector<8x32xf32>
    %281 = vector.extract_strided_slice %278 {offsets = [0, 64], sizes = [8, 32], strides = [1, 1]} : vector<8x128xf32> to vector<8x32xf32>
    %282 = vector.extract_strided_slice %278 {offsets = [0, 96], sizes = [8, 32], strides = [1, 1]} : vector<8x128xf32> to vector<8x32xf32>
    %283 = arith.mulf %280, %258 : vector<8x32xf32>
    %284 = arith.mulf %279, %281 : vector<8x32xf32>
    %285 = arith.addf %283, %284 : vector<8x32xf32>
    %286 = math.tanh %285 : vector<8x32xf32>
    %287 = arith.mulf %282, %286 : vector<8x32xf32>
    %288 = vector.broadcast %15 : vector<1x32xf32> to vector<8x32xf32>
    %289 = arith.mulf %287, %288 : vector<8x32xf32>
    %cst_95 = arith.constant dense<0.000000e+00> : vector<8xf32>
    %290 = vector.multi_reduction <add>, %289, %cst_95 [1] : vector<8x32xf32> to vector<8xf32>
    %291 = vector.shape_cast %290 : vector<8xf32> to vector<8x1xf32>
    %292 = vector.broadcast %16 : vector<1x1xf32> to vector<8x1xf32>
    %293 = arith.addf %291, %292 : vector<8x1xf32>
    %294 = arith.index_cast %270 : i32 to index
    %c0_96 = arith.constant 0 : index
    %295 = vector.load %arg12[%294, %c0_96] : memref<64x1xf32, #tpu.memory_space<vmem>>, vector<8x1xf32>
    tpu.vector_store %arg12[%294, %c0_96], %293 {strides = array<i32>} : memref<64x1xf32, #tpu.memory_space<vmem>>, vector<8x1xf32>,
    %c3_i32_97 = arith.constant 3 : i32
    %c8_i32_98 = arith.constant 8 : i32
    %296 = arith.muli %c3_i32_97, %c8_i32_98 : i32
    %297 = tpu.assume_multiple %296, 8 : i32
    %298 = arith.index_cast %297 : i32 to index
    %c0_99 = arith.constant 0 : index
    %299 = vector.load %arg17[%298, %c0_99] : memref<64x128xf32, #tpu.memory_space<vmem>>, vector<8x128xf32>
    %cst_100 = arith.constant dense<0.000000e+00> : vector<8x128xf32>
    %300 = tpu.matmul %287, %204, %cst_100 {dimension_numbers = #tpu.dot_dimension_numbers<[1], [0], [0], [1], [0, 0, 1, 1], [], []>} : vector<8x32xf32>, vector<32x128xf32>, vector<8x128xf32> -> vector<8x128xf32>
    %301 = arith.addf %299, %300 : vector<8x128xf32>
    %302 = arith.mulf %301, %11 : vector<8x128xf32>
    %303 = math.tanh %302 : vector<8x128xf32>
    %304 = arith.mulf %303, %11 : vector<8x128xf32>
    %305 = arith.addf %304, %14 : vector<8x128xf32>
    %306 = vector.extract_strided_slice %305 {offsets = [0, 0], sizes = [8, 32], strides = [1, 1]} : vector<8x128xf32> to vector<8x32xf32>
    %307 = vector.extract_strided_slice %305 {offsets = [0, 32], sizes = [8, 32], strides = [1, 1]} : vector<8x128xf32> to vector<8x32xf32>
    %308 = vector.extract_strided_slice %305 {offsets = [0, 64], sizes = [8, 32], strides = [1, 1]} : vector<8x128xf32> to vector<8x32xf32>
    %309 = vector.extract_strided_slice %305 {offsets = [0, 96], sizes = [8, 32], strides = [1, 1]} : vector<8x128xf32> to vector<8x32xf32>
    %310 = arith.mulf %307, %285 : vector<8x32xf32>
    %311 = arith.mulf %306, %308 : vector<8x32xf32>
    %312 = arith.addf %310, %311 : vector<8x32xf32>
    %313 = math.tanh %312 : vector<8x32xf32>
    %314 = arith.mulf %309, %313 : vector<8x32xf32>
    %315 = vector.broadcast %15 : vector<1x32xf32> to vector<8x32xf32>
    %316 = arith.mulf %314, %315 : vector<8x32xf32>
    %cst_101 = arith.constant dense<0.000000e+00> : vector<8xf32>
    %317 = vector.multi_reduction <add>, %316, %cst_101 [1] : vector<8x32xf32> to vector<8xf32>
    %318 = vector.shape_cast %317 : vector<8xf32> to vector<8x1xf32>
    %319 = vector.broadcast %16 : vector<1x1xf32> to vector<8x1xf32>
    %320 = arith.addf %318, %319 : vector<8x1xf32>
    %321 = arith.index_cast %297 : i32 to index
    %c0_102 = arith.constant 0 : index
    %322 = vector.load %arg12[%321, %c0_102] : memref<64x1xf32, #tpu.memory_space<vmem>>, vector<8x1xf32>
    tpu.vector_store %arg12[%321, %c0_102], %320 {strides = array<i32>} : memref<64x1xf32, #tpu.memory_space<vmem>>, vector<8x1xf32>,
    %c4_i32_103 = arith.constant 4 : i32
    %c8_i32_104 = arith.constant 8 : i32
    %323 = arith.muli %c4_i32_103, %c8_i32_104 : i32
    %324 = tpu.assume_multiple %323, 8 : i32
    %325 = arith.index_cast %324 : i32 to index
    %c0_105 = arith.constant 0 : index
    %326 = vector.load %arg17[%325, %c0_105] : memref<64x128xf32, #tpu.memory_space<vmem>>, vector<8x128xf32>
    %cst_106 = arith.constant dense<0.000000e+00> : vector<8x128xf32>
    %327 = tpu.matmul %314, %204, %cst_106 {dimension_numbers = #tpu.dot_dimension_numbers<[1], [0], [0], [1], [0, 0, 1, 1], [], []>} : vector<8x32xf32>, vector<32x128xf32>, vector<8x128xf32> -> vector<8x128xf32>
    %328 = arith.addf %326, %327 : vector<8x128xf32>
    %329 = arith.mulf %328, %11 : vector<8x128xf32>
    %330 = math.tanh %329 : vector<8x128xf32>
    %331 = arith.mulf %330, %11 : vector<8x128xf32>
    %332 = arith.addf %331, %14 : vector<8x128xf32>
    %333 = vector.extract_strided_slice %332 {offsets = [0, 0], sizes = [8, 32], strides = [1, 1]} : vector<8x128xf32> to vector<8x32xf32>
    %334 = vector.extract_strided_slice %332 {offsets = [0, 32], sizes = [8, 32], strides = [1, 1]} : vector<8x128xf32> to vector<8x32xf32>
    %335 = vector.extract_strided_slice %332 {offsets = [0, 64], sizes = [8, 32], strides = [1, 1]} : vector<8x128xf32> to vector<8x32xf32>
    %336 = vector.extract_strided_slice %332 {offsets = [0, 96], sizes = [8, 32], strides = [1, 1]} : vector<8x128xf32> to vector<8x32xf32>
    %337 = arith.mulf %334, %312 : vector<8x32xf32>
    %338 = arith.mulf %333, %335 : vector<8x32xf32>
    %339 = arith.addf %337, %338 : vector<8x32xf32>
    %340 = math.tanh %339 : vector<8x32xf32>
    %341 = arith.mulf %336, %340 : vector<8x32xf32>
    %342 = vector.broadcast %15 : vector<1x32xf32> to vector<8x32xf32>
    %343 = arith.mulf %341, %342 : vector<8x32xf32>
    %cst_107 = arith.constant dense<0.000000e+00> : vector<8xf32>
    %344 = vector.multi_reduction <add>, %343, %cst_107 [1] : vector<8x32xf32> to vector<8xf32>
    %345 = vector.shape_cast %344 : vector<8xf32> to vector<8x1xf32>
    %346 = vector.broadcast %16 : vector<1x1xf32> to vector<8x1xf32>
    %347 = arith.addf %345, %346 : vector<8x1xf32>
    %348 = arith.index_cast %324 : i32 to index
    %c0_108 = arith.constant 0 : index
    %349 = vector.load %arg12[%348, %c0_108] : memref<64x1xf32, #tpu.memory_space<vmem>>, vector<8x1xf32>
    tpu.vector_store %arg12[%348, %c0_108], %347 {strides = array<i32>} : memref<64x1xf32, #tpu.memory_space<vmem>>, vector<8x1xf32>,
    %c5_i32_109 = arith.constant 5 : i32
    %c8_i32_110 = arith.constant 8 : i32
    %350 = arith.muli %c5_i32_109, %c8_i32_110 : i32
    %351 = tpu.assume_multiple %350, 8 : i32
    %352 = arith.index_cast %351 : i32 to index
    %c0_111 = arith.constant 0 : index
    %353 = vector.load %arg17[%352, %c0_111] : memref<64x128xf32, #tpu.memory_space<vmem>>, vector<8x128xf32>
    %cst_112 = arith.constant dense<0.000000e+00> : vector<8x128xf32>
    %354 = tpu.matmul %341, %204, %cst_112 {dimension_numbers = #tpu.dot_dimension_numbers<[1], [0], [0], [1], [0, 0, 1, 1], [], []>} : vector<8x32xf32>, vector<32x128xf32>, vector<8x128xf32> -> vector<8x128xf32>
    %355 = arith.addf %353, %354 : vector<8x128xf32>
    %356 = arith.mulf %355, %11 : vector<8x128xf32>
    %357 = math.tanh %356 : vector<8x128xf32>
    %358 = arith.mulf %357, %11 : vector<8x128xf32>
    %359 = arith.addf %358, %14 : vector<8x128xf32>
    %360 = vector.extract_strided_slice %359 {offsets = [0, 0], sizes = [8, 32], strides = [1, 1]} : vector<8x128xf32> to vector<8x32xf32>
    %361 = vector.extract_strided_slice %359 {offsets = [0, 32], sizes = [8, 32], strides = [1, 1]} : vector<8x128xf32> to vector<8x32xf32>
    %362 = vector.extract_strided_slice %359 {offsets = [0, 64], sizes = [8, 32], strides = [1, 1]} : vector<8x128xf32> to vector<8x32xf32>
    %363 = vector.extract_strided_slice %359 {offsets = [0, 96], sizes = [8, 32], strides = [1, 1]} : vector<8x128xf32> to vector<8x32xf32>
    %364 = arith.mulf %361, %339 : vector<8x32xf32>
    %365 = arith.mulf %360, %362 : vector<8x32xf32>
    %366 = arith.addf %364, %365 : vector<8x32xf32>
    %367 = math.tanh %366 : vector<8x32xf32>
    %368 = arith.mulf %363, %367 : vector<8x32xf32>
    %369 = vector.broadcast %15 : vector<1x32xf32> to vector<8x32xf32>
    %370 = arith.mulf %368, %369 : vector<8x32xf32>
    %cst_113 = arith.constant dense<0.000000e+00> : vector<8xf32>
    %371 = vector.multi_reduction <add>, %370, %cst_113 [1] : vector<8x32xf32> to vector<8xf32>
    %372 = vector.shape_cast %371 : vector<8xf32> to vector<8x1xf32>
    %373 = vector.broadcast %16 : vector<1x1xf32> to vector<8x1xf32>
    %374 = arith.addf %372, %373 : vector<8x1xf32>
    %375 = arith.index_cast %351 : i32 to index
    %c0_114 = arith.constant 0 : index
    %376 = vector.load %arg12[%375, %c0_114] : memref<64x1xf32, #tpu.memory_space<vmem>>, vector<8x1xf32>
    tpu.vector_store %arg12[%375, %c0_114], %374 {strides = array<i32>} : memref<64x1xf32, #tpu.memory_space<vmem>>, vector<8x1xf32>,
    %c6_i32_115 = arith.constant 6 : i32
    %c8_i32_116 = arith.constant 8 : i32
    %377 = arith.muli %c6_i32_115, %c8_i32_116 : i32
    %378 = tpu.assume_multiple %377, 8 : i32
    %379 = arith.index_cast %378 : i32 to index
    %c0_117 = arith.constant 0 : index
    %380 = vector.load %arg17[%379, %c0_117] : memref<64x128xf32, #tpu.memory_space<vmem>>, vector<8x128xf32>
    %cst_118 = arith.constant dense<0.000000e+00> : vector<8x128xf32>
    %381 = tpu.matmul %368, %204, %cst_118 {dimension_numbers = #tpu.dot_dimension_numbers<[1], [0], [0], [1], [0, 0, 1, 1], [], []>} : vector<8x32xf32>, vector<32x128xf32>, vector<8x128xf32> -> vector<8x128xf32>
    %382 = arith.addf %380, %381 : vector<8x128xf32>
    %383 = arith.mulf %382, %11 : vector<8x128xf32>
    %384 = math.tanh %383 : vector<8x128xf32>
    %385 = arith.mulf %384, %11 : vector<8x128xf32>
    %386 = arith.addf %385, %14 : vector<8x128xf32>
    %387 = vector.extract_strided_slice %386 {offsets = [0, 0], sizes = [8, 32], strides = [1, 1]} : vector<8x128xf32> to vector<8x32xf32>
    %388 = vector.extract_strided_slice %386 {offsets = [0, 32], sizes = [8, 32], strides = [1, 1]} : vector<8x128xf32> to vector<8x32xf32>
    %389 = vector.extract_strided_slice %386 {offsets = [0, 64], sizes = [8, 32], strides = [1, 1]} : vector<8x128xf32> to vector<8x32xf32>
    %390 = vector.extract_strided_slice %386 {offsets = [0, 96], sizes = [8, 32], strides = [1, 1]} : vector<8x128xf32> to vector<8x32xf32>
    %391 = arith.mulf %388, %366 : vector<8x32xf32>
    %392 = arith.mulf %387, %389 : vector<8x32xf32>
    %393 = arith.addf %391, %392 : vector<8x32xf32>
    %394 = math.tanh %393 : vector<8x32xf32>
    %395 = arith.mulf %390, %394 : vector<8x32xf32>
    %396 = vector.broadcast %15 : vector<1x32xf32> to vector<8x32xf32>
    %397 = arith.mulf %395, %396 : vector<8x32xf32>
    %cst_119 = arith.constant dense<0.000000e+00> : vector<8xf32>
    %398 = vector.multi_reduction <add>, %397, %cst_119 [1] : vector<8x32xf32> to vector<8xf32>
    %399 = vector.shape_cast %398 : vector<8xf32> to vector<8x1xf32>
    %400 = vector.broadcast %16 : vector<1x1xf32> to vector<8x1xf32>
    %401 = arith.addf %399, %400 : vector<8x1xf32>
    %402 = arith.index_cast %378 : i32 to index
    %c0_120 = arith.constant 0 : index
    %403 = vector.load %arg12[%402, %c0_120] : memref<64x1xf32, #tpu.memory_space<vmem>>, vector<8x1xf32>
    tpu.vector_store %arg12[%402, %c0_120], %401 {strides = array<i32>} : memref<64x1xf32, #tpu.memory_space<vmem>>, vector<8x1xf32>,
    %c7_i32_121 = arith.constant 7 : i32
    %c8_i32_122 = arith.constant 8 : i32
    %404 = arith.muli %c7_i32_121, %c8_i32_122 : i32
    %405 = tpu.assume_multiple %404, 8 : i32
    %406 = arith.index_cast %405 : i32 to index
    %c0_123 = arith.constant 0 : index
    %407 = vector.load %arg17[%406, %c0_123] : memref<64x128xf32, #tpu.memory_space<vmem>>, vector<8x128xf32>
    %cst_124 = arith.constant dense<0.000000e+00> : vector<8x128xf32>
    %408 = tpu.matmul %395, %204, %cst_124 {dimension_numbers = #tpu.dot_dimension_numbers<[1], [0], [0], [1], [0, 0, 1, 1], [], []>} : vector<8x32xf32>, vector<32x128xf32>, vector<8x128xf32> -> vector<8x128xf32>
    %409 = arith.addf %407, %408 : vector<8x128xf32>
    %410 = arith.mulf %409, %11 : vector<8x128xf32>
    %411 = math.tanh %410 : vector<8x128xf32>
    %412 = arith.mulf %411, %11 : vector<8x128xf32>
    %413 = arith.addf %412, %14 : vector<8x128xf32>
    %414 = vector.extract_strided_slice %413 {offsets = [0, 0], sizes = [8, 32], strides = [1, 1]} : vector<8x128xf32> to vector<8x32xf32>
    %415 = vector.extract_strided_slice %413 {offsets = [0, 32], sizes = [8, 32], strides = [1, 1]} : vector<8x128xf32> to vector<8x32xf32>
    %416 = vector.extract_strided_slice %413 {offsets = [0, 64], sizes = [8, 32], strides = [1, 1]} : vector<8x128xf32> to vector<8x32xf32>
    %417 = vector.extract_strided_slice %413 {offsets = [0, 96], sizes = [8, 32], strides = [1, 1]} : vector<8x128xf32> to vector<8x32xf32>
    %418 = arith.mulf %415, %393 : vector<8x32xf32>
    %419 = arith.mulf %414, %416 : vector<8x32xf32>
    %420 = arith.addf %418, %419 : vector<8x32xf32>
    %421 = math.tanh %420 : vector<8x32xf32>
    %422 = arith.mulf %417, %421 : vector<8x32xf32>
    %423 = vector.broadcast %15 : vector<1x32xf32> to vector<8x32xf32>
    %424 = arith.mulf %422, %423 : vector<8x32xf32>
    %cst_125 = arith.constant dense<0.000000e+00> : vector<8xf32>
    %425 = vector.multi_reduction <add>, %424, %cst_125 [1] : vector<8x32xf32> to vector<8xf32>
    %426 = vector.shape_cast %425 : vector<8xf32> to vector<8x1xf32>
    %427 = vector.broadcast %16 : vector<1x1xf32> to vector<8x1xf32>
    %428 = arith.addf %426, %427 : vector<8x1xf32>
    %429 = arith.index_cast %405 : i32 to index
    %c0_126 = arith.constant 0 : index
    %430 = vector.load %arg12[%429, %c0_126] : memref<64x1xf32, #tpu.memory_space<vmem>>, vector<8x1xf32>
    tpu.vector_store %arg12[%429, %c0_126], %428 {strides = array<i32>} : memref<64x1xf32, #tpu.memory_space<vmem>>, vector<8x1xf32>,
    %c8_i32_127 = arith.constant 8 : i32
    %c1_128 = arith.constant 1 : index
    %c0_129 = arith.constant 0 : index
    %c0_130 = arith.constant 0 : index
    %431 = vector.load %arg15[%c1_128, %c0_129, %c0_130] : memref<2x8x32xf32, #tpu.memory_space<vmem>>, vector<1x8x32xf32>
    %432 = vector.shape_cast %431 : vector<1x8x32xf32> to vector<8x32xf32>
    %433 = vector.shape_cast %422 : vector<8x32xf32> to vector<1x8x32xf32>
    tpu.vector_store %arg15[%c1_128, %c0_129, %c0_130], %433 {strides = array<i32>} : memref<2x8x32xf32, #tpu.memory_space<vmem>>, vector<1x8x32xf32>,
    %c1_131 = arith.constant 1 : index
    %c0_132 = arith.constant 0 : index
    %c0_133 = arith.constant 0 : index
    %434 = vector.load %arg16[%c1_131, %c0_132, %c0_133] : memref<2x8x32xf32, #tpu.memory_space<vmem>>, vector<1x8x32xf32>
    %435 = vector.shape_cast %434 : vector<1x8x32xf32> to vector<8x32xf32>
    %436 = vector.shape_cast %420 : vector<8x32xf32> to vector<1x8x32xf32>
    tpu.vector_store %arg16[%c1_131, %c0_132, %c0_133], %436 {strides = array<i32>} : memref<2x8x32xf32, #tpu.memory_space<vmem>>, vector<1x8x32xf32>,
    %c0_134 = arith.constant 0 : index
    %c0_135 = arith.constant 0 : index
    %c0_136 = arith.constant 0 : index
    %437 = vector.load %arg15[%c0_134, %c0_135, %c0_136] : memref<2x8x32xf32, #tpu.memory_space<vmem>>, vector<2x8x32xf32>
    %c0_137 = arith.constant 0 : index
    %c0_138 = arith.constant 0 : index
    %c0_139 = arith.constant 0 : index
    %438 = vector.load %arg13[%c0_137, %c0_138, %c0_139] : memref<2x8x32xf32, #tpu.memory_space<vmem>>, vector<2x8x32xf32>
    tpu.vector_store %arg13[%c0_137, %c0_138, %c0_139], %437 {strides = array<i32>} : memref<2x8x32xf32, #tpu.memory_space<vmem>>, vector<2x8x32xf32>,
    %c0_140 = arith.constant 0 : index
    %c0_141 = arith.constant 0 : index
    %c0_142 = arith.constant 0 : index
    %439 = vector.load %arg16[%c0_140, %c0_141, %c0_142] : memref<2x8x32xf32, #tpu.memory_space<vmem>>, vector<2x8x32xf32>
    %c0_143 = arith.constant 0 : index
    %c0_144 = arith.constant 0 : index
    %c0_145 = arith.constant 0 : index
    %440 = vector.load %arg14[%c0_143, %c0_144, %c0_145] : memref<2x8x32xf32, #tpu.memory_space<vmem>>, vector<2x8x32xf32>
    tpu.vector_store %arg14[%c0_143, %c0_144, %c0_145], %439 {strides = array<i32>} : memref<2x8x32xf32, #tpu.memory_space<vmem>>, vector<2x8x32xf32>,
    return
  }
  func.func @transform_0(%arg0: i32) -> (i32, i32) {
    %c0_i32 = arith.constant 0 : i32
    %c0_i32_0 = arith.constant 0 : i32
    return %arg0, %c0_i32 : i32, i32
  }
  func.func @transform_1(%arg0: i32) -> (i32, i32, i32) {
    %c0_i32 = arith.constant 0 : i32
    %c0_i32_0 = arith.constant 0 : i32
    %c0_i32_1 = arith.constant 0 : i32
    %c0_i32_2 = arith.constant 0 : i32
    return %c0_i32, %c0_i32_0, %c0_i32_1 : i32, i32, i32
  }
  func.func @transform_2(%arg0: i32) -> (i32, i32, i32) {
    %c0_i32 = arith.constant 0 : i32
    %c0_i32_0 = arith.constant 0 : i32
    %c0_i32_1 = arith.constant 0 : i32
    %c0_i32_2 = arith.constant 0 : i32
    return %c0_i32, %c0_i32_0, %c0_i32_1 : i32, i32, i32
  }
  func.func @transform_3(%arg0: i32) -> (i32, i32) {
    %c0_i32 = arith.constant 0 : i32
    %c0_i32_0 = arith.constant 0 : i32
    %c0_i32_1 = arith.constant 0 : i32
    return %c0_i32, %c0_i32_0 : i32, i32
  }
  func.func @transform_4(%arg0: i32) -> (i32, i32) {
    %c0_i32 = arith.constant 0 : i32
    %c0_i32_0 = arith.constant 0 : i32
    %c0_i32_1 = arith.constant 0 : i32
    return %c0_i32, %c0_i32_0 : i32, i32
  }
  func.func @transform_5(%arg0: i32) -> (i32, i32) {
    %c0_i32 = arith.constant 0 : i32
    %c0_i32_0 = arith.constant 0 : i32
    %c0_i32_1 = arith.constant 0 : i32
    return %c0_i32, %c0_i32_0 : i32, i32
  }
  func.func @transform_6(%arg0: i32) -> (i32, i32) {
    %c0_i32 = arith.constant 0 : i32
    %c0_i32_0 = arith.constant 0 : i32
    %c0_i32_1 = arith.constant 0 : i32
    return %c0_i32, %c0_i32_0 : i32, i32
  }
  func.func @transform_7(%arg0: i32) -> (i32, i32) {
    %c0_i32 = arith.constant 0 : i32
    %c0_i32_0 = arith.constant 0 : i32
    %c0_i32_1 = arith.constant 0 : i32
    return %c0_i32, %c0_i32_0 : i32, i32
  }
  func.func @transform_8(%arg0: i32) -> (i32, i32) {
    %c0_i32 = arith.constant 0 : i32
    %c0_i32_0 = arith.constant 0 : i32
    %c0_i32_1 = arith.constant 0 : i32
    return %c0_i32, %c0_i32_0 : i32, i32
  }
  func.func @transform_9(%arg0: i32) -> (i32, i32) {
    %c0_i32 = arith.constant 0 : i32
    %c0_i32_0 = arith.constant 0 : i32
    %c0_i32_1 = arith.constant 0 : i32
    return %c0_i32, %c0_i32_0 : i32, i32
  }
  func.func @transform_10(%arg0: i32) -> (i32, i32) {
    %c0_i32 = arith.constant 0 : i32
    %c0_i32_0 = arith.constant 0 : i32
    %c0_i32_1 = arith.constant 0 : i32
    return %c0_i32, %c0_i32_0 : i32, i32
  }
  func.func @transform_11(%arg0: i32) -> (i32, i32) {
    %c0_i32 = arith.constant 0 : i32
    %c0_i32_0 = arith.constant 0 : i32
    return %arg0, %c0_i32 : i32, i32
  }
  func.func @transform_12(%arg0: i32) -> (i32, i32, i32) {
    %c0_i32 = arith.constant 0 : i32
    %c0_i32_0 = arith.constant 0 : i32
    %c0_i32_1 = arith.constant 0 : i32
    %c0_i32_2 = arith.constant 0 : i32
    return %c0_i32, %c0_i32_0, %c0_i32_1 : i32, i32, i32
  }
  func.func @transform_13(%arg0: i32) -> (i32, i32, i32) {
    %c0_i32 = arith.constant 0 : i32
    %c0_i32_0 = arith.constant 0 : i32
    %c0_i32_1 = arith.constant 0 : i32
    %c0_i32_2 = arith.constant 0 : i32
    return %c0_i32, %c0_i32_0, %c0_i32_1 : i32, i32, i32
  }
}

</mosaic_0001>

<bundles_post_ra>
// kernel: tpu_custom_call.1
= control target key start
LH: loop header
LB: loop body
LE: loop exit
PB: predicated region body
PF: predicated region fallthrough
CT: control target
= control target key end

     0   :  { %s3508_s0 = inlined_call_operand.vmem [shape: f32[64,4], index: 0, kind: input, shape index: {}]   ;;  %s3509_s1 = inlined_call_operand.hbm [shape: f32[2,8,32], index: 1, kind: input, shape index: {}]   ;;  %s3510_s2 = inlined_call_operand.hbm [shape: f32[2,8,32], index: 2, kind: input, shape index: {}]   ;;  %s3511_s3 = inlined_call_operand.hbm [shape: f32[4,128], index: 3, kind: input, shape index: {}]   ;;  %s3512_s4 = inlined_call_operand.vmem [shape: f32[32,128], index: 4, kind: input, shape index: {}]   ;;  %s3513_s5 = inlined_call_operand.vmem [shape: f32[1,128], index: 5, kind: input, shape index: {}]   ;;  %s3514_s6 = inlined_call_operand.vmem [shape: f32[32,128], index: 6, kind: input, shape index: {}]   ;;  %s3515_s7 = inlined_call_operand.vmem [shape: f32[32,128], index: 7, kind: input, shape index: {}]   ;;  %s3516_s8 = inlined_call_operand.vmem [shape: f32[1,128], index: 8, kind: input, shape index: {}]   ;;  %s3517_s9 = inlined_call_operand.vmem [shape: f32[1,32], index: 9, kind: input, shape index: {}]   ;;  %s3518_s10 = inlined_call_operand.<no memory space> [shape: f32[1,1], index: 10, kind: input, shape index: {}]   ;;  %s3519_s11 = inlined_call_operand.vmem [shape: f32[64,1], index: 11, kind: output, shape index: {0}]   ;;  %s3520_s12 = inlined_call_operand.hbm [shape: f32[2,8,32], index: 12, kind: output, shape index: {1}]   ;;  %s3521_s13 = inlined_call_operand.hbm [shape: f32[2,8,32], index: 13, kind: output, shape index: {2}]  }
   0x1   :  { %v19_v0 = vstv %s3518_s10 }
   0x2   :  { %20 = vst [vmem:[#allocation6] sm:$0x1] %v19_v0 }
   0x3   :  { %21 = vsyncpa [#allocation8], 0 }
   0x4   :  { %22 = vsyncpa [#allocation11], 0 }
   0x5   :  { %23 = vsyncpa [#allocation9], 0 }
   0x6   :  { %24 = vsyncpa [#allocation15], 0  ;;  %s2859_s27 = smov [#allocation10]   ;;  %s2860_s29 = smov [#allocation7]  }
   0x7   :  { %s44_s28 = sshll.u32 %s2859_s27, 4  ;;  %s32_s30 = sshll.u32 %s2860_s29, 4  ;;  %s45_s28 = int_to_ptr.vmem [resolvable:$true] %s44_s28  ;;  %s2946_s30 = int_to_ptr.vmem [resolvable:$true] %s32_s30 }
   0x8   :  { %s2741_s16 = scalar_lea.hbm %s3510_s2, 256 }
   0x9   :  { %p2742_p0 = scmp.ne.s32.totalorder %s3510_s2, %s2741_s16  ;;  %p2745_p1 = scmp.lt.u32.totalorder %s2741_s16, %s3510_s2 }
   0xb   :  { %p2747_p2 = pnand %p2745_p1, %p2742_p0 }
   0xd   :  { %2750 = shalt.err (!%p2747_p2)
}
   0xe   :  { %s2751_s20 = scalar_lea.vmem %s45_s28, 256  ;;  %p2756_p4 = scmp.lt.s32.totalorder %s45_s28, %s45_s28 }
   0xf   :  { %p2752_p3 = scmp.ne.s32.totalorder %s45_s28, %s2751_s20  ;;  %p2757_p5 = scmp.lt.s32.totalorder %s2751_s20, %s2751_s20 }
  0x11   :  { %p2758_p6 = por %p2757_p5, %p2756_p4 }
  0x13   :  { %p2759_p7 = pnand %p2758_p6, %p2752_p3 }
  0x15   :  { %2762 = shalt.err (!%p2759_p7)
}
  0x16   :  { %s2861_s21 = smov 128   ;;  %s2862_s22 = smov 8  }
  0x17   :  { %50 = dma.hbm_to_vmem [thread:$0]  %s3510_s2, 256, %s45_s28, [#allocation11], %s2861_s21, %s2861_s21, %s2862_s22  }
  0x18   :  { %s2763_s27 = scalar_lea.hbm %s3509_s1, 256 }
  0x19   :  { %p2764_p8 = scmp.ne.s32.totalorder %s3509_s1, %s2763_s27  ;;  %p2767_p9 = scmp.lt.u32.totalorder %s2763_s27, %s3509_s1 }
  0x1b   :  { %p2769_p10 = pnand %p2767_p9, %p2764_p8 }
  0x1d   :  { %2772 = shalt.err (!%p2769_p10)
}
  0x1e   :  { %s2773_s17 = scalar_lea.vmem %s2946_s30, 256  ;;  %p2778_p12 = scmp.lt.s32.totalorder %s2946_s30, %s2946_s30 }
  0x1f   :  { %p2774_p11 = scmp.ne.s32.totalorder %s2946_s30, %s2773_s17  ;;  %p2779_p13 = scmp.lt.s32.totalorder %s2773_s17, %s2773_s17 }
  0x21   :  { %p2780_p0 = por %p2779_p13, %p2778_p12 }
  0x23   :  { %p2781_p1 = pnand %p2780_p0, %p2774_p11 }
  0x25   :  { %2784 = shalt.err (!%p2781_p1)
}
  0x26   :  { %38 = dma.hbm_to_vmem [thread:$0]  %s3509_s1, 256, %s2946_s30, [#allocation8], %s2861_s21, %s2861_s21, %s2862_s22  }
  0x27   :  { %s2863_s18 = smov [#allocation12]   ;;  %s2785_s23 = scalar_lea.hbm %s3511_s3, 64 }
  0x28   :  { %s57_s10 = sshll.u32 %s2863_s18, 4  ;;  %p2786_p2 = scmp.ne.s32.totalorder %s3511_s3, %s2785_s23  ;;  %s58_s10 = int_to_ptr.vmem [resolvable:$true] %s57_s10 }
  0x29   :  { %p2789_p3 = scmp.lt.u32.totalorder %s2785_s23, %s3511_s3 }
  0x2b   :  { %p2791_p4 = pnand %p2789_p3, %p2786_p2 }
  0x2d   :  { %2794 = shalt.err (!%p2791_p4)
}
  0x2e   :  { %s2795_s29 = scalar_lea.vmem %s58_s10, 64  ;;  %p2800_p6 = scmp.lt.s32.totalorder %s58_s10, %s58_s10 }
  0x2f   :  { %p2796_p5 = scmp.ne.s32.totalorder %s58_s10, %s2795_s29  ;;  %p2801_p7 = scmp.lt.s32.totalorder %s2795_s29, %s2795_s29 }
  0x31   :  { %p2802_p8 = por %p2801_p7, %p2800_p6 }
  0x33   :  { %p2803_p9 = pnand %p2802_p8, %p2796_p5 }
  0x35   :  { %2806 = shalt.err (!%p2803_p9)
}
  0x36   :  { %60 = dma.hbm_to_vmem [thread:$0]  %s3511_s3, 64, %s58_s10, [#allocation11]  }
  0x37   :  { %2851 = dma.done.wait [#allocation8], 256  }
  0x38   :  { %2852 = vsyncadd [#allocation8], 4294967040 }
  0x39   :  { %2853 = dma.done.wait [#allocation11], 320  }
  0x3a   :  { %2854 = vsyncadd [#allocation11], 4294966976  ;;  %v2864_v1 = vmov 0.0|0.0   ;;  %vm2865_vm0 = vmmov 0   ;;  %v2866_v2 = vmov 0.0   ;;  %vm151_vm1 = vcmask 1043456  }
  0x3b   :  { %2559 = vmatprep.subr.bf16.mxu1 %v2864_v1  ;;  %2371 = vmatprep.mubr.msk.f32.mxu1 %vm2865_vm0, %v2866_v2  ;;  %vm126_vm2 = vcmask 31744   ;;  %v107_v3 = vld [vmem:[%s3512_s4] sm:$0xff]  ;;  %v108_v4 = vld [vmem:[%s3512_s4 + $0x8] sm:$0xff]  ;;  %vm90_vm3 = vcmask 261120   ;;  %v109_v9 = vld [vmem:[%s3512_s4 + $0x10] sm:$0xff]  ;;  %v97_v15 = vlaneseq  ;;  %v2867_v21 = vmov 0.5  }
  0x3c   :  { %v106_v5 = vld [vmem:[#allocation12] sm:$0xf]  ;;  %v3004_v6 = vpack.c.bf16 %v108_v4, %v107_v3  ;;  %v113_v8 = vld [vmem:[%s3508_s0 + $0x8] sm:$0xff]  ;;  %v110_v10 = vld [vmem:[%s3512_s4 + $0x18] sm:$0xff]  ;;  %s2869_s25 = smov 32   ;;  %vm1383_vm7 = vcmask 7168  }
  0x3d   :  { %2349 = vmatprep.subr.msk.mxu0 %vm151_vm1, %v106_v5  ;;  %v112_v7 = vld [vmem:[%s3508_s0] sm:$0xff]  ;;  %v3021_v12 = vpack.c.bf16 %v110_v10, %v109_v9  ;;  %v93_v14 = vld [vmem:[#allocation10] sm:$0xff]  ;;  %v98_v16 = vand.u32 127, %v97_v15  ;;  %v117_v58 = vld [vmem:[%s3508_s0 + $0x28] sm:$0xff]  ;;  %s2871_s24 = smov [#allocation14]  }
  0x3e   :  { %2350 = vmatpush3.msk.msra.mxu0 %vm151_vm1, %v106_v5  ;;  %2351 = vmatprep.mubr.msk.f32.mxu0 %vm126_vm2, %v112_v7  ;;  %v88_v11 = vld [vmem:[#allocation7] sm:$0xff]  ;;  %95 = vst.msk [vmem:[#allocation3] sm:$0xff] %vm90_vm3, %v93_v14  ;;  %v3043_v19 = vld [vmem:[%s3513_s5] ss:$0 sm:$0xff]  ;;  %s2868_s5 = smov 64   ;;  %v114_v55 = vld [vmem:[%s3508_s0 + $0x10] sm:$0xff] }
  0x3f   :  { %2561 = vmatpush3.bf16.msra.mxu1 %v3004_v6  ;;  %2352 = vmatmul.mubr.msk.f32.vlgmr.msra.gmra.mrb[0].mxu0 %vm126_vm2, %v113_v8  ;;  %91 = vst.msk [vmem:[#allocation2] sm:$0xff] %vm90_vm3, %v88_v11  ;;  %vm99_vm4 = vcmp.ge.s32.totalorder %v98_v16, 64  ;;  %vm100_vm5 = vcmp.lt.s32.totalorder %v98_v16, 96  ;;  %v115_v56 = vld [vmem:[%s3508_s0 + $0x18] sm:$0xff]  ;;  %v116_v57 = vld [vmem:[%s3508_s0 + $0x20] sm:$0xff]  ;;  %v118_v59 = vld [vmem:[%s3508_s0 + $0x30] sm:$0xff] }
  0x40   :  { %2562 = vmatprep.subr.bf16.mxu1 %v2864_v1  ;;  %2571 = vmatprep.subr.bf16.mxu0 %v2864_v1  ;;  %vm101_vm6 = vmand %vm99_vm4, %vm100_vm5  ;;  %v119_v60 = vld [vmem:[%s3508_s0 + $0x38] sm:$0xff] }
  0x41   :  { %2573 = vmatpush3.bf16.msra.mxu0 %v3004_v6  ;;  %v3046_v22 = vsel %vm101_vm6, 1.0, %v2867_v21  ;;  %v3049_v28 = vsel %vm101_vm6, 0.0, %v2867_v21  ;;  %2354 = vmatprep.mubr.msk.f32.mxu0 %vm126_vm2, %v114_v55 }
  0x42   :  { %2574 = vmatprep.subr.bf16.mxu0 %v2864_v1 }
  0x43   :  { %2564 = vmatpush3.bf16.msra.mxu1 %v3021_v12  ;;  %2355 = vmatmul.mubr.msk.f32.gmra.mrb[2].mxu0 %vm126_vm2, %v115_v56 }
  0x44   :  { %2565 = vmatprep.subr.bf16.mxu1 %v2864_v1  ;;  %2357 = vmatprep.mubr.msk.f32.mxu0 %vm126_vm2, %v116_v57 }
  0x45   :  { %2576 = vmatpush3.bf16.msra.mxu0 %v3021_v12  ;;  %v269_v31 = vld [vmem:[#allocation3] sm:$0xff] }
  0x46   :  { %v268_v13 = vld [vmem:[#allocation2] sm:$0xff]  ;;  %2583 = vmatprep.subr.bf16.mxu0 %v2864_v1 }
  0x47   :  { %2372 = vmatmul.mubr.msk.f32.vlgmr.msra.gmra.mrb[0].mxu1 %vm90_vm3, %v268_v13  ;;  %2358 = vmatmul.mubr.msk.f32.gmra.mrb[4].mxu0 %vm126_vm2, %v117_v58 }
  0x48   :  { %2567 = vmatpush3.bf16.msra.mxu1 %v3004_v6  ;;  %2382 = vmatprep.mubr.msk.f32.mxu1 %vm2865_vm0, %v2866_v2 }
  0x49   :  { %2568 = vmatprep.subr.bf16.mxu1 %v2864_v1  ;;  %2360 = vmatprep.mubr.msk.f32.mxu0 %vm126_vm2, %v118_v59 }
  0x4b   :  { %2361 = vmatmul.mubr.msk.f32.gmra.mrb[6].mxu0 %vm126_vm2, %v119_v60 }
  0x4c   :  { %2570 = vmatpush3.bf16.msra.mxu1 %v3021_v12  ;;  %2393 = vmatprep.mubr.msk.f32.mxu0 %vm2865_vm0, %v2866_v2 }
  0x4d   :  { %2577 = vmatprep.subr.bf16.mxu1 %v2864_v1 }
 0x112   :  { %v2353_v17 = vpop.f32.mrb[0].mxu0 }
 0x113   :  { %v221_v18 = vpop.f32.mrb[1].mxu0  ;;  %v227_v42 = vadd.f32 %v2353_v17, %v3043_v19 }
 0x114   :  { %v222_v20 = vadd.f32 %v3043_v19, %v221_v18 }
 0x116   :  { %v2356_v0 = vpop.f32.mrb[2].mxu0 }
 0x117   :  { %v231_v3 = vpop.f32.mrb[3].mxu0 }
 0x118   :  { %v232_v10 = vadd.f32 %v3043_v19, %v231_v3 }
 0x11a   :  { %v341_v23 = vpop.f32.mrb[0].mxu1  ;;  %v3100_v4 = vpop.f32.mrb[4].mxu0 }
 0x11b   :  { %v345_v24 = vadd.f32 %v341_v23, %v222_v20  ;;  %v2373_v25 = vpop.f32.mrb[1].mxu1  ;;  %v3102_v5 = vpop.f32.mrb[5].mxu0  ;;  %v247_v3 = vadd.f32 %v3100_v4, %v3043_v19 }
 0x11d   :  { %v346_v26 = vmul.f32 %v345_v24, %v3046_v22 }
 0x11e   :  { %v3104_v7 = vpop.f32.mrb[6].mxu0 }
 0x11f   :  { %2677 = vtanh.f32 %v346_v26  ;;  %v3106_v8 = vpop.f32.mrb[7].mxu0 }
 0x129   :  { %v2678_v27 = vpop.eup %2677 }
 0x12a   :  { %v348_v29 = vmul.f32 %v2678_v27, %v3046_v22 }
 0x12c   :  { %v349_v30 = vadd.f32 %v348_v29, %v3049_v28 }
 0x12e   :  { %356 = vrot.lane.b32.xlu0 %v349_v30, %s2868_s5 }
 0x132   :  { %351 = vrot.lane.b32.xlu0 %v269_v31, %s2869_s25  ;;  %v237_v31 = vadd.f32 %v2356_v0, %v3043_v19 }
 0x1a0   :  { %v357_v32 = vpop.permute.xlu0 %356 }
 0x1a1   :  { %v359_v33 = vmul.f32 %v357_v32, %v349_v30 }
 0x1a3   :  { %361 = vrot.lane.b32.xlu1 %v359_v33, %s2869_s25 }
 0x1a4   :  { %v352_v34 = vpop.permute.xlu0 %351 }
 0x1a5   :  { %v354_v35 = vmul.f32 %v352_v34, %v349_v30 }
 0x215   :  { %v362_v36 = vpop.permute.xlu1 %361 }
 0x216   :  { %v364_v37 = vadd.f32 %v362_v36, %v354_v35 }
 0x218   :  { %2679 = vtanh.f32 %v364_v37 }
 0x222   :  { %v2680_v38 = vpop.eup %2679 }
 0x223   :  { %367 = vrot.lane.b32.xlu1 %v2680_v38, %s2868_s5 }
 0x295   :  { %v368_v39 = vpop.permute.xlu1 %367 }
 0x296   :  { %v370_v40 = vmul.f32 %v368_v39, %v349_v30 }
 0x298   :  { %372 = vrot.lane.b32.xlu0 %v370_v40, %s2869_s25 }
 0x30a   :  { %v373_v41 = vpop.permute.xlu0 %372 }
 0x30b   :  { %375 = vst.msk [vmem:[#allocation5] sm:$0xff] %vm90_vm3, %v373_v41  ;;  %2383 = vmatmul.mubr.msk.f32.vlgmr.msra.gmra.mrb[2].mxu1 %vm90_vm3, %v373_v41 }
 0x30c   :  { %2579 = vmatpush3.bf16.msra.mxu1 %v3004_v6  ;;  %2404 = vmatprep.mubr.msk.f32.mxu1 %vm2865_vm0, %v2866_v2 }
 0x30d   :  { %2580 = vmatprep.subr.bf16.mxu1 %v2864_v1 }
 0x310   :  { %2582 = vmatpush3.bf16.msra.mxu1 %v3021_v12 }
 0x311   :  { %2589 = vmatprep.subr.bf16.mxu1 %v2864_v1 }
 0x3de   :  { %v446_v43 = vpop.f32.mrb[2].mxu1 }
 0x3df   :  { %v450_v44 = vadd.f32 %v446_v43, %v227_v42  ;;  %v2384_v45 = vpop.f32.mrb[3].mxu1 }
 0x3e1   :  { %v451_v46 = vmul.f32 %v450_v44, %v3046_v22 }
 0x3e3   :  { %2681 = vtanh.f32 %v451_v46 }
 0x3ed   :  { %v2682_v47 = vpop.eup %2681 }
 0x3ee   :  { %v453_v48 = vmul.f32 %v2682_v47, %v3046_v22 }
 0x3f0   :  { %v454_v49 = vadd.f32 %v453_v48, %v3049_v28  ;;  %v242_v48 = vadd.f32 %v3043_v19, %v3102_v5 }
 0x3f2   :  { %457 = vrot.lane.b32.xlu1 %v454_v49, %s2868_s5  ;;  %v455_v52 = vmul.f32 %v454_v49, %v364_v37 }
 0x464   :  { %v458_v50 = vpop.permute.xlu1 %457 }
 0x465   :  { %v460_v51 = vmul.f32 %v458_v50, %v454_v49 }
 0x467   :  { %462 = vrot.lane.b32.xlu0 %v460_v51, %s2869_s25 }
 0x4d9   :  { %v463_v53 = vpop.permute.xlu0 %462 }
 0x4da   :  { %v465_v54 = vadd.f32 %v463_v53, %v455_v52 }
 0x4dc   :  { %2683 = vtanh.f32 %v465_v54 }
 0x4e6   :  { %v2684_v61 = vpop.eup %2683 }
 0x4e7   :  { %468 = vrot.lane.b32.xlu1 %v2684_v61, %s2868_s5 }
 0x559   :  { %v469_v62 = vpop.permute.xlu1 %468 }
 0x55a   :  { %v471_v63 = vmul.f32 %v469_v62, %v454_v49 }
 0x55c   :  { %473 = vrot.lane.b32.xlu0 %v471_v63, %s2869_s25 }
 0x5ce   :  { %v474_v9 = vpop.permute.xlu0 %473 }
 0x5cf   :  { %477 = vst.msk [vmem:[#allocation5 + $0x8] sm:$0xff] %vm90_vm3, %v474_v9  ;;  %2394 = vmatmul.mubr.msk.f32.vlgmr.msra.gmra.mrb[8].mxu0 %vm90_vm3, %v474_v9 }
 0x5d0   :  { %2585 = vmatpush3.bf16.msra.mxu0 %v3004_v6  ;;  %2415 = vmatprep.mubr.msk.f32.mxu0 %vm2865_vm0, %v2866_v2 }
 0x5d1   :  { %2586 = vmatprep.subr.bf16.mxu0 %v2864_v1 }
 0x5d4   :  { %2588 = vmatpush3.bf16.msra.mxu0 %v3021_v12 }
 0x5d5   :  { %2595 = vmatprep.subr.bf16.mxu0 %v2864_v1 }
 0x6a2   :  { %v548_v11 = vpop.f32.mrb[8].mxu0 }
 0x6a3   :  { %v552_v13 = vadd.f32 %v548_v11, %v232_v10  ;;  %v2395_v14 = vpop.f32.mrb[9].mxu0 }
 0x6a5   :  { %v553_v15 = vmul.f32 %v552_v13, %v3046_v22 }
 0x6a7   :  { %2685 = vtanh.f32 %v553_v15 }
 0x6b1   :  { %v2686_v16 = vpop.eup %2685 }
 0x6b2   :  { %v555_v17 = vmul.f32 %v2686_v16, %v3046_v22 }
 0x6b4   :  { %v556_v18 = vadd.f32 %v555_v17, %v3049_v28 }
 0x6b6   :  { %559 = vrot.lane.b32.xlu1 %v556_v18, %s2868_s5  ;;  %v557_v23 = vmul.f32 %v556_v18, %v465_v54 }
 0x728   :  { %v560_v20 = vpop.permute.xlu1 %559 }
 0x729   :  { %v562_v21 = vmul.f32 %v560_v20, %v556_v18  ;;  %v1097_v20 = vld [vmem:[%s3514_s6 + $0x8] sm:$0xff] }
 0x72b   :  { %564 = vrot.lane.b32.xlu0 %v562_v21, %s2869_s25 }
 0x79d   :  { %v565_v24 = vpop.permute.xlu0 %564 }
 0x79e   :  { %v567_v25 = vadd.f32 %v565_v24, %v557_v23 }
 0x7a0   :  { %2687 = vtanh.f32 %v567_v25 }
 0x7aa   :  { %v2688_v26 = vpop.eup %2687 }
 0x7ab   :  { %570 = vrot.lane.b32.xlu1 %v2688_v26, %s2868_s5  ;;  %v1098_v26 = vld [vmem:[%s3514_s6 + $0x10] sm:$0xff] }
 0x81d   :  { %v571_v27 = vpop.permute.xlu1 %570 }
 0x81e   :  { %v573_v29 = vmul.f32 %v571_v27, %v556_v18  ;;  %v1096_v18 = vld [vmem:[%s3514_s6] sm:$0xff]  ;;  %v1099_v27 = vld [vmem:[%s3514_s6 + $0x18] sm:$0xff]  ;;  %s2185_s6 = sshll.u32 %s2871_s24, 4  ;;  %s2186_s6 = int_to_ptr.vmem [resolvable:$true] %s2185_s6 }
 0x81f   :  { %v2607_v21 = vpack.c.bf16 %v1097_v20, %v1096_v18  ;;  %s2807_s29 = scalar_lea.vmem %s2186_s6, 256  ;;  %p2812_p11 = scmp.lt.s32.totalorder %s2186_s6, %s2186_s6 }
 0x820   :  { %575 = vrot.lane.b32.xlu0 %v573_v29, %s2869_s25  ;;  %v2611_v29 = vpack.c.bf16 %v1099_v27, %v1098_v26  ;;  %p2808_p10 = scmp.ne.s32.totalorder %s2186_s6, %s2807_s29  ;;  %p2813_p12 = scmp.lt.s32.totalorder %s2807_s29, %s2807_s29 }
 0x822   :  { %p2814_p13 = por %p2813_p12, %p2812_p11 }
 0x824   :  { %p2815_p0 = pnand %p2814_p13, %p2808_p10 }
 0x892   :  { %v576_v30 = vpop.permute.xlu0 %575 }
 0x893   :  { %579 = vst.msk [vmem:[#allocation5 + $0x10] sm:$0xff] %vm90_vm3, %v576_v30  ;;  %2405 = vmatmul.mubr.msk.f32.vlgmr.msra.gmra.mrb[4].mxu1 %vm90_vm3, %v576_v30 }
 0x894   :  { %2591 = vmatpush3.bf16.msra.mxu1 %v3004_v6  ;;  %2426 = vmatprep.mubr.msk.f32.mxu1 %vm2865_vm0, %v2866_v2 }
 0x895   :  { %2592 = vmatprep.subr.bf16.mxu1 %v2864_v1 }
 0x898   :  { %2594 = vmatpush3.bf16.msra.mxu1 %v3021_v12 }
 0x899   :  { %2601 = vmatprep.subr.bf16.mxu1 %v2864_v1 }
 0x966   :  { %v650_v32 = vpop.f32.mrb[4].mxu1 }
 0x967   :  { %v654_v33 = vadd.f32 %v650_v32, %v237_v31  ;;  %v2406_v34 = vpop.f32.mrb[5].mxu1  ;;  %v1105_v31 = vld [vmem:[#allocation5] sm:$0xff]  ;;  %v1106_v32 = vld [vmem:[#allocation5 + $0x8] sm:$0xff] }
 0x969   :  { %v655_v35 = vmul.f32 %v654_v33, %v3046_v22  ;;  %v1107_v33 = vld [vmem:[#allocation5 + $0x10] sm:$0xff] }
 0x96b   :  { %2689 = vtanh.f32 %v655_v35 }
 0x975   :  { %v2690_v36 = vpop.eup %2689 }
 0x976   :  { %v657_v37 = vmul.f32 %v2690_v36, %v3046_v22 }
 0x978   :  { %v658_v38 = vadd.f32 %v657_v37, %v3049_v28  ;;  %v252_v37 = vadd.f32 %v3043_v19, %v3106_v8 }
 0x97a   :  { %661 = vrot.lane.b32.xlu1 %v658_v38, %s2868_s5  ;;  %v659_v41 = vmul.f32 %v658_v38, %v567_v25 }
 0x9ec   :  { %v662_v39 = vpop.permute.xlu1 %661 }
 0x9ed   :  { %v664_v40 = vmul.f32 %v662_v39, %v658_v38 }
 0x9ef   :  { %666 = vrot.lane.b32.xlu0 %v664_v40, %s2869_s25 }
 0xa61   :  { %v667_v42 = vpop.permute.xlu0 %666 }
 0xa62   :  { %v669_v43 = vadd.f32 %v667_v42, %v659_v41 }
 0xa64   :  { %2691 = vtanh.f32 %v669_v43 }
 0xa6e   :  { %v2692_v44 = vpop.eup %2691 }
 0xa6f   :  { %672 = vrot.lane.b32.xlu1 %v2692_v44, %s2868_s5 }
 0xae1   :  { %v673_v45 = vpop.permute.xlu1 %672 }
 0xae2   :  { %v675_v46 = vmul.f32 %v673_v45, %v658_v38 }
 0xae4   :  { %677 = vrot.lane.b32.xlu0 %v675_v46, %s2869_s25 }
 0xb56   :  { %v678_v47 = vpop.permute.xlu0 %677 }
 0xb57   :  { %681 = vst.msk [vmem:[#allocation5 + $0x18] sm:$0xff] %vm90_vm3, %v678_v47  ;;  %2416 = vmatmul.mubr.msk.f32.vlgmr.msra.gmra.mrb[10].mxu0 %vm90_vm3, %v678_v47 }
 0xb58   :  { %2597 = vmatpush3.bf16.msra.mxu0 %v3004_v6  ;;  %2437 = vmatprep.mubr.msk.f32.mxu0 %vm2865_vm0, %v2866_v2 }
 0xb59   :  { %2598 = vmatprep.subr.bf16.mxu0 %v2864_v1 }
 0xb5c   :  { %2600 = vmatpush3.bf16.msra.mxu0 %v3021_v12 }
 0xb5d   :  { %2608 = vmatprep.subr.bf16.mxu0 %v2607_v21 }
 0xb5e   :  { %v1108_v34 = vld [vmem:[#allocation5 + $0x18] sm:$0xff] }
 0xc2a   :  { %v752_v49 = vpop.f32.mrb[10].mxu0 }
 0xc2b   :  { %v756_v50 = vadd.f32 %v752_v49, %v242_v48  ;;  %v2417_v51 = vpop.f32.mrb[11].mxu0 }
 0xc2d   :  { %v757_v52 = vmul.f32 %v756_v50, %v3046_v22 }
 0xc2f   :  { %2693 = vtanh.f32 %v757_v52 }
 0xc39   :  { %v2694_v53 = vpop.eup %2693 }
 0xc3a   :  { %v759_v54 = vmul.f32 %v2694_v53, %v3046_v22 }
 0xc3c   :  { %v760_v55 = vadd.f32 %v759_v54, %v3049_v28 }
 0xc3e   :  { %763 = vrot.lane.b32.xlu1 %v760_v55, %s2868_s5  ;;  %v761_v58 = vmul.f32 %v760_v55, %v669_v43 }
 0xcb0   :  { %v764_v56 = vpop.permute.xlu1 %763 }
 0xcb1   :  { %v766_v57 = vmul.f32 %v764_v56, %v760_v55  ;;  %v1100_v56 = vld [vmem:[%s3515_s7] sm:$0xff] }
 0xcb3   :  { %768 = vrot.lane.b32.xlu0 %v766_v57, %s2869_s25  ;;  %v1101_v57 = vld [vmem:[%s3515_s7 + $0x8] sm:$0xff] }
 0xd25   :  { %v769_v59 = vpop.permute.xlu0 %768 }
 0xd26   :  { %v771_v60 = vadd.f32 %v769_v59, %v761_v58  ;;  %v3221_v58 = vpack.c.bf16 %v1101_v57, %v1100_v56  ;;  %v89_v59 = vld [vmem:[#allocation7 + $0x8] sm:$0xff] }
 0xd27   :  { %92 = vst.msk [vmem:[#allocation2 + $0x8] sm:$0xff] %vm90_vm3, %v89_v59 }
 0xd28   :  { %2695 = vtanh.f32 %v771_v60 }
 0xd32   :  { %v2696_v61 = vpop.eup %2695 }
 0xd33   :  { %774 = vrot.lane.b32.xlu1 %v2696_v61, %s2868_s5  ;;  %v1103_v61 = vld [vmem:[%s3515_s7 + $0x18] sm:$0xff] }
 0xda5   :  { %v775_v62 = vpop.permute.xlu1 %774 }
 0xda6   :  { %v777_v63 = vmul.f32 %v775_v62, %v760_v55 }
 0xda8   :  { %779 = vrot.lane.b32.xlu0 %v777_v63, %s2869_s25  ;;  %v94_v63 = vld [vmem:[#allocation10 + $0x8] sm:$0xff] }
 0xda9   :  { %96 = vst.msk [vmem:[#allocation3 + $0x8] sm:$0xff] %vm90_vm3, %v94_v63 }
 0xe1a   :  { %v780_v0 = vpop.permute.xlu0 %779 }
 0xe1b   :  { %783 = vst.msk [vmem:[#allocation5 + $0x20] sm:$0xff] %vm90_vm3, %v780_v0  ;;  %2427 = vmatmul.mubr.msk.f32.vlgmr.msra.gmra.mrb[6].mxu1 %vm90_vm3, %v780_v0 }
 0xe1c   :  { %2603 = vmatpush3.bf16.msra.mxu1 %v3004_v6  ;;  %2448 = vmatprep.mubr.msk.f32.mxu1 %vm2865_vm0, %v2866_v2 }
 0xe1d   :  { %2604 = vmatprep.subr.bf16.mxu1 %v2864_v1 }
 0xe20   :  { %2606 = vmatpush3.bf16.msra.mxu1 %v3021_v12 }
 0xe21   :  { %2615 = vmatprep.subr.bf16.mxu1 %v2864_v1 }
 0xe22   :  { %v1109_v35 = vld [vmem:[#allocation5 + $0x20] sm:$0xff] }
 0xeee   :  { %v854_v5 = vpop.f32.mrb[6].mxu1 }
 0xeef   :  { %v858_v9 = vadd.f32 %v854_v5, %v247_v3  ;;  %v2428_v10 = vpop.f32.mrb[7].mxu1  ;;  %v1259_v5 = vld [vmem:[#allocation3 + $0x8] sm:$0xff] }
 0xef0   :  { %v1257_v10 = vld [vmem:[#allocation2 + $0x8] sm:$0xff] }
 0xef1   :  { %v859_v11 = vmul.f32 %v858_v9, %v3046_v22 }
 0xef3   :  { %2697 = vtanh.f32 %v859_v11 }
 0xefd   :  { %v2698_v13 = vpop.eup %2697 }
 0xefe   :  { %v861_v6 = vmul.f32 %v2698_v13, %v3046_v22  ;;  %v257_v13 = vadd.f32 %v3104_v7, %v3043_v19 }
 0xf00   :  { %v862_v14 = vadd.f32 %v861_v6, %v3049_v28 }
 0xf02   :  { %865 = vrot.lane.b32.xlu1 %v862_v14, %s2868_s5  ;;  %v863_v16 = vmul.f32 %v862_v14, %v771_v60  ;;  %v1102_v60 = vld [vmem:[%s3515_s7 + $0x10] sm:$0xff] }
 0xf03   :  { %v3232_v62 = vpack.c.bf16 %v1103_v61, %v1102_v60 }
 0xf74   :  { %v866_v15 = vpop.permute.xlu1 %865 }
 0xf75   :  { %v868_v12 = vmul.f32 %v866_v15, %v862_v14 }
 0xf77   :  { %870 = vrot.lane.b32.xlu0 %v868_v12, %s2869_s25  ;;  %v3260_v12 = vld [vmem:[%s3516_s8] ss:$0 sm:$0xff]  ;;  %s2870_s8 = smov 96  }
 0xfe9   :  { %v871_v17 = vpop.permute.xlu0 %870 }
 0xfea   :  { %v873_v4 = vadd.f32 %v871_v17, %v863_v16 }
 0xfec   :  { %2699 = vtanh.f32 %v873_v4 }
 0xff6   :  { %v2700_v23 = vpop.eup %2699 }
 0xff7   :  { %876 = vrot.lane.b32.xlu1 %v2700_v23, %s2868_s5 }
0x1069   :  { %v877_v24 = vpop.permute.xlu1 %876 }
0x106a   :  { %v879_v25 = vmul.f32 %v877_v24, %v862_v14 }
0x106c   :  { %881 = vrot.lane.b32.xlu0 %v879_v25, %s2869_s25 }
0x10de   :  { %v882_v30 = vpop.permute.xlu0 %881 }
0x10df   :  { %885 = vst.msk [vmem:[#allocation5 + $0x28] sm:$0xff] %vm90_vm3, %v882_v30  ;;  %2438 = vmatmul.mubr.msk.f32.vlgmr.msra.gmra.mrb[12].mxu0 %vm90_vm3, %v882_v30 }
0x10e0   :  { %2610 = vmatpush3.bf16.msra.mxu0 %v2607_v21  ;;  %2459 = vmatprep.mubr.msk.f32.mxu0 %vm90_vm3, %v1105_v31 }
0x10e1   :  { %2612 = vmatprep.subr.bf16.mxu0 %v2611_v29 }
0x10e4   :  { %2614 = vmatpush3.bf16.msra.mxu0 %v2611_v29 }
0x10e5   :  { %2627 = vmatprep.subr.bf16.mxu0 %v2864_v1 }
0x10e6   :  { %v1110_v36 = vld [vmem:[#allocation5 + $0x28] sm:$0xff] }
0x10e7   :  { %2460 = vmatmul.mubr.msk.f32.vlgmr.msra.gmra.mrb[14].mxu0 %vm90_vm3, %v1106_v32 }
0x10e8   :  { %2462 = vmatprep.mubr.msk.f32.mxu0 %vm90_vm3, %v1107_v33  ;;  %2629 = vmatpush3.bf16.msra.mxu0 %v3221_v58 }
0x10e9   :  { %2630 = vmatprep.subr.bf16.mxu0 %v2864_v1 }
0x10eb   :  { %2463 = vmatmul.mubr.msk.f32.gmra.mrb[16].mxu0 %vm90_vm3, %v1108_v34 }
0x10ec   :  { %2465 = vmatprep.mubr.msk.f32.mxu0 %vm90_vm3, %v1109_v35  ;;  %2632 = vmatpush3.bf16.msra.mxu0 %v3232_v62 }
0x10ed   :  { %2639 = vmatprep.subr.bf16.mxu0 %v2864_v1 }
0x10ef   :  { %2466 = vmatmul.mubr.msk.f32.gmra.mrb[18].mxu0 %vm90_vm3, %v1110_v36 }
0x11b2   :  { %v956_v38 = vpop.f32.mrb[12].mxu0 }
0x11b3   :  { %v960_v39 = vadd.f32 %v956_v38, %v252_v37  ;;  %v2439_v40 = vpop.f32.mrb[13].mxu0 }
0x11b5   :  { %v961_v41 = vmul.f32 %v960_v39, %v3046_v22 }
0x11b7   :  { %2701 = vtanh.f32 %v961_v41 }
0x11ba   :  { %v3197_v42 = vpop.f32.mrb[14].mxu0 }
0x11bb   :  { %v1209_v43 = vpop.f32.mrb[15].mxu0 }
0x11bc   :  { %v1210_v16 = vadd.f32 %v3260_v12, %v1209_v43 }
0x11be   :  { %v3199_v44 = vpop.f32.mrb[16].mxu0 }
0x11bf   :  { %v3201_v45 = vpop.f32.mrb[17].mxu0 }
0x11c1   :  { %v2702_v46 = vpop.eup %2701 }
0x11c2   :  { %v3203_v47 = vpop.f32.mrb[18].mxu0  ;;  %v963_v48 = vmul.f32 %v2702_v46, %v3046_v22 }
0x11c3   :  { %v3206_v49 = vpop.f32.mrb[19].mxu0 }
0x11c4   :  { %v964_v8 = vadd.f32 %v963_v48, %v3049_v28 }
0x11c6   :  { %967 = vrot.lane.b32.xlu1 %v964_v8, %s2868_s5  ;;  %v965_v52 = vmul.f32 %v964_v8, %v873_v4 }
0x1238   :  { %v968_v50 = vpop.permute.xlu1 %967 }
0x1239   :  { %v970_v51 = vmul.f32 %v968_v50, %v964_v8  ;;  %v1215_v50 = vadd.f32 %v3197_v42, %v3260_v12 }
0x123b   :  { %972 = vrot.lane.b32.xlu0 %v970_v51, %s2869_s25 }
0x12ad   :  { %v973_v53 = vpop.permute.xlu0 %972 }
0x12ae   :  { %v3211_v54 = vadd.f32 %v973_v53, %v965_v52 }
0x12b0   :  { %2703 = vtanh.f32 %v3211_v54 }
0x12ba   :  { %v2704_v55 = vpop.eup %2703 }
0x12bb   :  { %978 = vrot.lane.b32.xlu1 %v2704_v55, %s2868_s5 }
0x132d   :  { %v979_v0 = vpop.permute.xlu1 %978 }
0x132e   :  { %v981_v3 = vmul.f32 %v979_v0, %v964_v8 }
0x1330   :  { %983 = vrot.lane.b32.xlu0 %v981_v3, %s2869_s25 }
0x1334   :  { %1340 = vrot.lane.b32.xlu0 %v1259_v5, %s2869_s25 }
0x13a2   :  { %v984_v9 = vpop.permute.xlu0 %983 }
0x13a3   :  { %987 = vst.msk [vmem:[#allocation5 + $0x30] sm:$0xff] %vm90_vm3, %v984_v9  ;;  %2449 = vmatmul.mubr.msk.f32.vlgmr.msra.gmra.mrb[8].mxu1 %vm90_vm3, %v984_v9 }
0x13a4   :  { %2617 = vmatpush3.bf16.msra.mxu1 %v3221_v58  ;;  %2479 = vmatprep.mubr.msk.f32.mxu1 %vm2865_vm0, %v2866_v2 }
0x13a5   :  { %2618 = vmatprep.subr.bf16.mxu1 %v2864_v1 }
0x13a6   :  { %v1341_v26 = vpop.permute.xlu0 %1340 }
0x13a8   :  { %2620 = vmatpush3.bf16.msra.mxu1 %v3232_v62 }
0x13a9   :  { %2621 = vmatprep.subr.bf16.mxu1 %v2864_v1 }
0x13aa   :  { %v1111_v11 = vld [vmem:[#allocation5 + $0x30] sm:$0xff] }
0x13ab   :  { %2480 = vmatmul.mubr.msk.f32.vlgmr.msra.gmra.mrb[10].mxu1 %vm90_vm3, %v1257_v10  ;;  %2468 = vmatprep.mubr.msk.f32.mxu0 %vm90_vm3, %v1111_v11 }
0x13ac   :  { %2623 = vmatpush3.bf16.msra.mxu1 %v3221_v58  ;;  %2490 = vmatprep.mubr.msk.f32.mxu1 %vm2865_vm0, %v2866_v2 }
0x13ad   :  { %2624 = vmatprep.subr.bf16.mxu1 %v2864_v1 }
0x13b0   :  { %2626 = vmatpush3.bf16.msra.mxu1 %v3232_v62 }
0x13b1   :  { %2633 = vmatprep.subr.bf16.mxu1 %v2864_v1 }
0x1476   :  { %v1058_v6 = vpop.f32.mrb[8].mxu1 }
0x1477   :  { %v1062_v14 = vadd.f32 %v1058_v6, %v257_v13  ;;  %v2450_v15 = vpop.f32.mrb[9].mxu1 }
0x1478   :  { %v1220_v15 = vadd.f32 %v3260_v12, %v3201_v45 }
0x1479   :  { %v1063_v25 = vmul.f32 %v1062_v14, %v3046_v22 }
0x147e   :  { %v1330_v17 = vpop.f32.mrb[10].mxu1 }
0x147f   :  { %v1334_v4 = vadd.f32 %v1330_v17, %v1210_v16  ;;  %v2481_v18 = vpop.f32.mrb[11].mxu1 }
0x1481   :  { %v1335_v20 = vmul.f32 %v1334_v4, %v3046_v22 }
0x1483   :  { %2705 = vtanh.f32 %v1335_v20 }
0x1484   :  { %2707 = vtanh.f32 %v1063_v25 }
0x148d   :  { %v2706_v21 = vpop.eup %2705 }
0x148e   :  { %v1337_v23 = vmul.f32 %v2706_v21, %v3046_v22  ;;  %v2708_v31 = vpop.eup %2707 }
0x148f   :  { %v1065_v32 = vmul.f32 %v2708_v31, %v3046_v22  ;;  %v1225_v31 = vadd.f32 %v3199_v44, %v3260_v12 }
0x1490   :  { %v1338_v19 = vadd.f32 %v1337_v23, %v3049_v28 }
0x1491   :  { %v1066_v34 = vadd.f32 %v1065_v32, %v3049_v28 }
0x1492   :  { %1345 = vrot.lane.b32.xlu1 %v1338_v19, %s2868_s5  ;;  %v1343_v27 = vmul.f32 %v1341_v26, %v1338_v19 }
0x1493   :  { %v1067_v40 = vmul.f32 %v1066_v34, %v3211_v54 }
0x1504   :  { %v1346_v7 = vpop.permute.xlu1 %1345 }
0x1505   :  { %v1348_v24 = vmul.f32 %v1346_v7, %v1338_v19 }
0x1507   :  { %1350 = vrot.lane.b32.xlu1 %v1348_v24, %s2869_s25 }
0x1579   :  { %v1351_v29 = vpop.permute.xlu1 %1350 }
0x157a   :  { %v1353_v30 = vadd.f32 %v1351_v29, %v1343_v27 }
0x157c   :  { %2709 = vtanh.f32 %v1353_v30 }
0x1586   :  { %v2710_v33 = vpop.eup %2709 }
0x1587   :  { %1356 = vrot.lane.b32.xlu0 %v2710_v33, %s2868_s5 }
0x158b   :  { %1069 = vrot.lane.b32.xlu0 %v1066_v34, %s2868_s5 }
0x15f9   :  { %v1357_v35 = vpop.permute.xlu0 %1356 }
0x15fa   :  { %v3273_v36 = vmul.f32 %v1357_v35, %v1338_v19 }
0x15fc   :  { %1387 = vrot.lane.b32.xlu1 %v3273_v36, %s2869_s25 }
0x15fd   :  { %v1070_v37 = vpop.permute.xlu0 %1069 }
0x15fe   :  { %v1072_v38 = vmul.f32 %v1070_v37, %v1066_v34 }
0x1600   :  { %1074 = vrot.lane.b32.xlu0 %v1072_v38, %s2869_s25 }
0x166e   :  { %v1388_v39 = vpop.permute.xlu1 %1387 }
0x166f   :  { %2491 = vmatmul.mubr.msk.f32.vlgmr.msra.gmra.mrb[12].mxu1 %vm90_vm3, %v1388_v39 }
0x1670   :  { %2635 = vmatpush3.bf16.msra.mxu1 %v3221_v58  ;;  %2512 = vmatprep.mubr.msk.f32.mxu1 %vm2865_vm0, %v2866_v2 }
0x1671   :  { %2636 = vmatprep.subr.bf16.mxu1 %v2864_v1 }
0x1672   :  { %v1075_v41 = vpop.permute.xlu0 %1074 }
0x1673   :  { %v3284_v43 = vadd.f32 %v1075_v41, %v1067_v40 }
0x1674   :  { %2638 = vmatpush3.bf16.msra.mxu1 %v3232_v62 }
0x1675   :  { %2711 = vtanh.f32 %v3284_v43  ;;  %2645 = vmatprep.subr.bf16.mxu1 %v2864_v1 }
0x167f   :  { %v2712_v46 = vpop.eup %2711 }
0x1680   :  { %1080 = vrot.lane.b32.xlu0 %v2712_v46, %s2868_s5 }
0x16f2   :  { %v1081_v48 = vpop.permute.xlu0 %1080 }
0x16f3   :  { %v1083_v8 = vmul.f32 %v1081_v48, %v1066_v34 }
0x16f5   :  { %1085 = vrot.lane.b32.xlu0 %v1083_v8, %s2869_s25 }
0x1742   :  { %v1457_v51 = vpop.f32.mrb[12].mxu1 }
0x1743   :  { %v1461_v52 = vadd.f32 %v1457_v51, %v1215_v50  ;;  %v2492_v53 = vpop.f32.mrb[13].mxu1 }
0x1744   :  { %v1230_v53 = vadd.f32 %v3260_v12, %v3206_v49 }
0x1745   :  { %v1462_v54 = vmul.f32 %v1461_v52, %v3046_v22 }
0x1747   :  { %2713 = vtanh.f32 %v1462_v54 }
0x1751   :  { %v2714_v55 = vpop.eup %2713 }
0x1752   :  { %v1464_v56 = vmul.f32 %v2714_v55, %v3046_v22 }
0x1754   :  { %v1465_v57 = vadd.f32 %v1464_v56, %v3049_v28 }
0x1756   :  { %1468 = vrot.lane.b32.xlu1 %v1465_v57, %s2868_s5  ;;  %v1466_v0 = vmul.f32 %v1465_v57, %v1353_v30 }
0x1767   :  { %v1086_v59 = vpop.permute.xlu0 %1085 }
0x1768   :  { %1089 = vst.msk [vmem:[#allocation5 + $0x38] sm:$0xff] %vm90_vm3, %v1086_v59  ;;  %1090 = vst.msk [vmem:[#allocation2] sm:$0xff] %vm90_vm3, %v1086_v59 }
0x176f   :  { %v1112_v60 = vld [vmem:[#allocation5 + $0x38] sm:$0xff]  ;;  %v2158_v42 = vld [vmem:[#allocation2] sm:$0xff] }
0x1770   :  { %2469 = vmatmul.mubr.msk.f32.gmra.mrb[20].mxu0 %vm90_vm3, %v1112_v60  ;;  %2160 = vst.msk [vmem:[#allocation13] sm:$0xff] %vm90_vm3, %v2158_v42 }
0x1771   :  { %2501 = vmatprep.mubr.msk.f32.mxu0 %vm2865_vm0, %v2866_v2 }
0x17c8   :  { %v1469_v61 = vpop.permute.xlu1 %1468 }
0x17c9   :  { %v1471_v63 = vmul.f32 %v1469_v61, %v1465_v57 }
0x17cb   :  { %1473 = vrot.lane.b32.xlu1 %v1471_v63, %s2869_s25 }
0x183d   :  { %v1474_v3 = vpop.permute.xlu1 %1473 }
0x183e   :  { %v1476_v5 = vadd.f32 %v1474_v3, %v1466_v0 }
0x1840   :  { %2715 = vtanh.f32 %v1476_v5 }
0x1843   :  { %v3304_v9 = vpop.f32.mrb[20].mxu0 }
0x1844   :  { %v3306_v10 = vpop.f32.mrb[21].mxu0 }
0x184a   :  { %v2716_v11 = vpop.eup %2715 }
0x184b   :  { %1479 = vrot.lane.b32.xlu1 %v2716_v11, %s2868_s5 }
0x18bd   :  { %v1480_v13 = vpop.permute.xlu1 %1479 }
0x18be   :  { %v3309_v6 = vmul.f32 %v1480_v13, %v1465_v57 }
0x18c0   :  { %1496 = vrot.lane.b32.xlu1 %v3309_v6, %s2869_s25 }
0x1932   :  { %v1497_v14 = vpop.permute.xlu1 %1496 }
0x1933   :  { %2502 = vmatmul.mubr.msk.f32.vlgmr.msra.gmra.mrb[22].mxu0 %vm90_vm3, %v1497_v14 }
0x1934   :  { %2641 = vmatpush3.bf16.msra.mxu0 %v3221_v58  ;;  %2523 = vmatprep.mubr.msk.f32.mxu0 %vm2865_vm0, %v2866_v2 }
0x1935   :  { %2642 = vmatprep.subr.bf16.mxu0 %v2864_v1 }
0x1938   :  { %2644 = vmatpush3.bf16.msra.mxu0 %v3232_v62 }
0x1939   :  { %2651 = vmatprep.subr.bf16.mxu0 %v2864_v1 }
0x1a06   :  { %v1566_v16 = vpop.f32.mrb[22].mxu0 }
0x1a07   :  { %v1570_v17 = vadd.f32 %v1566_v16, %v1220_v15  ;;  %v2503_v4 = vpop.f32.mrb[23].mxu0  ;;  %v1235_v15 = vadd.f32 %v3203_v47, %v3260_v12 }
0x1a09   :  { %v1571_v18 = vmul.f32 %v1570_v17, %v3046_v22 }
0x1a0b   :  { %2717 = vtanh.f32 %v1571_v18 }
0x1a15   :  { %v2718_v20 = vpop.eup %2717 }
0x1a16   :  { %v1573_v21 = vmul.f32 %v2718_v20, %v3046_v22 }
0x1a18   :  { %v1574_v23 = vadd.f32 %v1573_v21, %v3049_v28 }
0x1a1a   :  { %1577 = vrot.lane.b32.xlu0 %v1574_v23, %s2868_s5  ;;  %v1575_v24 = vmul.f32 %v1574_v23, %v1476_v5 }
0x1a8c   :  { %v1578_v19 = vpop.permute.xlu0 %1577 }
0x1a8d   :  { %v1580_v7 = vmul.f32 %v1578_v19, %v1574_v23 }
0x1a8f   :  { %1582 = vrot.lane.b32.xlu1 %v1580_v7, %s2869_s25 }
0x1b01   :  { %v1583_v25 = vpop.permute.xlu1 %1582 }
0x1b02   :  { %v1585_v45 = vadd.f32 %v1583_v25, %v1575_v24 }
0x1b04   :  { %2719 = vtanh.f32 %v1585_v45 }
0x1b0e   :  { %v2720_v26 = vpop.eup %2719 }
0x1b0f   :  { %1588 = vrot.lane.b32.xlu0 %v2720_v26, %s2868_s5 }
0x1b81   :  { %v1589_v27 = vpop.permute.xlu0 %1588 }
0x1b82   :  { %v3328_v29 = vmul.f32 %v1589_v27, %v1574_v23 }
0x1b84   :  { %1605 = vrot.lane.b32.xlu1 %v3328_v29, %s2869_s25 }
0x1bf6   :  { %v1606_v30 = vpop.permute.xlu1 %1605 }
0x1bf7   :  { %2513 = vmatmul.mubr.msk.f32.vlgmr.msra.gmra.mrb[14].mxu1 %vm90_vm3, %v1606_v30 }
0x1bf8   :  { %2647 = vmatpush3.bf16.msra.mxu1 %v3221_v58  ;;  %2534 = vmatprep.mubr.msk.f32.mxu1 %vm2865_vm0, %v2866_v2 }
0x1bf9   :  { %2648 = vmatprep.subr.bf16.mxu1 %v2864_v1 }
0x1bfc   :  { %2650 = vmatpush3.bf16.msra.mxu1 %v3232_v62 }
0x1bfd   :  { %2657 = vmatprep.subr.bf16.mxu1 %v2864_v1 }
0x1cca   :  { %v1675_v32 = vpop.f32.mrb[14].mxu1 }
0x1ccb   :  { %v1679_v33 = vadd.f32 %v1675_v32, %v1225_v31  ;;  %v2514_v34 = vpop.f32.mrb[15].mxu1 }
0x1ccd   :  { %v1680_v35 = vmul.f32 %v1679_v33, %v3046_v22 }
0x1ccf   :  { %2721 = vtanh.f32 %v1680_v35 }
0x1cd9   :  { %v2722_v37 = vpop.eup %2721 }
0x1cda   :  { %v1682_v38 = vmul.f32 %v2722_v37, %v3046_v22 }
0x1cdc   :  { %v1683_v39 = vadd.f32 %v1682_v38, %v3049_v28 }
0x1cde   :  { %1686 = vrot.lane.b32.xlu0 %v1683_v39, %s2868_s5  ;;  %v1684_v46 = vmul.f32 %v1683_v39, %v1585_v45  ;;  %v1240_v45 = vadd.f32 %v3260_v12, %v3306_v10 }
0x1d50   :  { %v1687_v40 = vpop.permute.xlu0 %1686 }
0x1d51   :  { %v1689_v41 = vmul.f32 %v1687_v40, %v1683_v39 }
0x1d53   :  { %1691 = vrot.lane.b32.xlu1 %v1689_v41, %s2869_s25 }
0x1dc5   :  { %v1692_v48 = vpop.permute.xlu1 %1691 }
0x1dc6   :  { %v1694_v44 = vadd.f32 %v1692_v48, %v1684_v46 }
0x1dc8   :  { %2723 = vtanh.f32 %v1694_v44 }
0x1dd2   :  { %v2724_v8 = vpop.eup %2723 }
0x1dd3   :  { %1697 = vrot.lane.b32.xlu0 %v2724_v8, %s2868_s5 }
0x1e45   :  { %v1698_v50 = vpop.permute.xlu0 %1697 }
0x1e46   :  { %v3347_v51 = vmul.f32 %v1698_v50, %v1683_v39 }
0x1e48   :  { %1714 = vrot.lane.b32.xlu1 %v3347_v51, %s2869_s25 }
0x1eba   :  { %v1715_v52 = vpop.permute.xlu1 %1714 }
0x1ebb   :  { %2524 = vmatmul.mubr.msk.f32.vlgmr.msra.gmra.mrb[24].mxu0 %vm90_vm3, %v1715_v52 }
0x1ebc   :  { %2653 = vmatpush3.bf16.msra.mxu0 %v3221_v58  ;;  %2545 = vmatprep.mubr.msk.f32.mxu0 %vm2865_vm0, %v2866_v2 }
0x1ebd   :  { %2654 = vmatprep.subr.bf16.mxu0 %v2864_v1 }
0x1ec0   :  { %2656 = vmatpush3.bf16.msra.mxu0 %v3232_v62 }
0x1f8e   :  { %v1784_v54 = vpop.f32.mrb[24].mxu0 }
0x1f8f   :  { %v1788_v55 = vadd.f32 %v1784_v54, %v1230_v53  ;;  %v2525_v56 = vpop.f32.mrb[25].mxu0 }
0x1f91   :  { %v1789_v57 = vmul.f32 %v1788_v55, %v3046_v22 }
0x1f93   :  { %2725 = vtanh.f32 %v1789_v57 }
0x1f9d   :  { %v2726_v59 = vpop.eup %2725 }
0x1f9e   :  { %v1791_v60 = vmul.f32 %v2726_v59, %v3046_v22 }
0x1fa0   :  { %v1792_v42 = vadd.f32 %v1791_v60, %v3049_v28 }
0x1fa2   :  { %1795 = vrot.lane.b32.xlu0 %v1792_v42, %s2868_s5  ;;  %v1793_v0 = vmul.f32 %v1792_v42, %v1694_v44  ;;  %v1245_v44 = vadd.f32 %v3304_v9, %v3260_v12  ;;  %v2232_v9 = vld [vmem:[%s3517_s9] ss:$0 sm:$0xff] }
0x2014   :  { %v1796_v61 = vpop.permute.xlu0 %1795 }
0x2015   :  { %v1798_v63 = vmul.f32 %v1796_v61, %v1792_v42 }
0x2017   :  { %1800 = vrot.lane.b32.xlu1 %v1798_v63, %s2869_s25 }
0x2089   :  { %v1801_v3 = vpop.permute.xlu1 %1800 }
0x208a   :  { %v1803_v49 = vadd.f32 %v1801_v3, %v1793_v0 }
0x208c   :  { %2727 = vtanh.f32 %v1803_v49 }
0x2096   :  { %v2728_v5 = vpop.eup %2727 }
0x2097   :  { %1806 = vrot.lane.b32.xlu0 %v2728_v5, %s2868_s5 }
0x2109   :  { %v1807_v11 = vpop.permute.xlu0 %1806 }
0x210a   :  { %v3365_v13 = vmul.f32 %v1807_v11, %v1792_v42 }
0x210c   :  { %1823 = vrot.lane.b32.xlu1 %v3365_v13, %s2869_s25 }
0x217e   :  { %v1824_v14 = vpop.permute.xlu1 %1823 }
0x217f   :  { %2535 = vmatmul.mubr.msk.f32.vlgmr.msra.gmra.mrb[16].mxu1 %vm90_vm3, %v1824_v14 }
0x2180   :  { %2659 = vmatpush3.bf16.msra.mxu1 %v3221_v58  ;;  %2556 = vmatprep.mubr.msk.f32.mxu1 %vm2865_vm0, %v2866_v2 }
0x2181   :  { %2660 = vmatprep.subr.bf16.mxu1 %v2864_v1 }
0x2184   :  { %2662 = vmatpush3.bf16.msra.mxu1 %v3232_v62 }
0x2252   :  { %v1893_v16 = vpop.f32.mrb[16].mxu1 }
0x2253   :  { %v1897_v17 = vadd.f32 %v1893_v16, %v1235_v15  ;;  %v2536_v4 = vpop.f32.mrb[17].mxu1 }
0x2255   :  { %v1898_v18 = vmul.f32 %v1897_v17, %v3046_v22 }
0x2257   :  { %2729 = vtanh.f32 %v1898_v18 }
0x2261   :  { %v2730_v20 = vpop.eup %2729 }
0x2262   :  { %v1900_v21 = vmul.f32 %v2730_v20, %v3046_v22 }
0x2264   :  { %v1901_v58 = vadd.f32 %v1900_v21, %v3049_v28 }
0x2266   :  { %1904 = vrot.lane.b32.xlu0 %v1901_v58, %s2868_s5  ;;  %v1902_v62 = vmul.f32 %v1901_v58, %v1803_v49 }
0x22d8   :  { %v1905_v2 = vpop.permute.xlu0 %1904 }
0x22d9   :  { %v1907_v1 = vmul.f32 %v1905_v2, %v1901_v58 }
0x22db   :  { %1909 = vrot.lane.b32.xlu1 %v1907_v1, %s2869_s25 }
0x234d   :  { %v1910_v23 = vpop.permute.xlu1 %1909 }
0x234e   :  { %v1912_v47 = vadd.f32 %v1910_v23, %v1902_v62 }
0x2350   :  { %2731 = vtanh.f32 %v1912_v47 }
0x235a   :  { %v2732_v19 = vpop.eup %2731 }
0x235b   :  { %1915 = vrot.lane.b32.xlu0 %v2732_v19, %s2868_s5 }
0x23cd   :  { %v1916_v7 = vpop.permute.xlu0 %1915 }
0x23ce   :  { %v3383_v24 = vmul.f32 %v1916_v7, %v1901_v58 }
0x23d0   :  { %1932 = vrot.lane.b32.xlu1 %v3383_v24, %s2869_s25 }
0x2442   :  { %v1933_v25 = vpop.permute.xlu1 %1932 }
0x2443   :  { %2546 = vmatmul.mubr.msk.f32.vlgmr.msra.gmra.mrb[26].mxu0 %vm90_vm3, %v1933_v25 }
0x2516   :  { %v2002_v26 = vpop.f32.mrb[26].mxu0 }
0x2517   :  { %v2006_v27 = vadd.f32 %v2002_v26, %v1240_v45  ;;  %v2547_v30 = vpop.f32.mrb[27].mxu0 }
0x2519   :  { %v2007_v31 = vmul.f32 %v2006_v27, %v3046_v22 }
0x251b   :  { %2733 = vtanh.f32 %v2007_v31 }
0x2525   :  { %v2734_v32 = vpop.eup %2733 }
0x2526   :  { %v2009_v33 = vmul.f32 %v2734_v32, %v3046_v22 }
0x2528   :  { %v2010_v34 = vadd.f32 %v2009_v33, %v3049_v28 }
0x252a   :  { %2013 = vrot.lane.b32.xlu0 %v2010_v34, %s2868_s5  ;;  %v2011_v38 = vmul.f32 %v2010_v34, %v1912_v47 }
0x259c   :  { %v2014_v35 = vpop.permute.xlu0 %2013 }
0x259d   :  { %v2016_v37 = vmul.f32 %v2014_v35, %v2010_v34 }
0x259f   :  { %2018 = vrot.lane.b32.xlu1 %v2016_v37, %s2869_s25 }
0x2611   :  { %v2019_v39 = vpop.permute.xlu1 %2018 }
0x2612   :  { %v2021_v10 = vadd.f32 %v2019_v39, %v2011_v38 }
0x2614   :  { %2735 = vtanh.f32 %v2021_v10 }
0x261e   :  { %v2736_v40 = vpop.eup %2735 }
0x261f   :  { %2024 = vrot.lane.b32.xlu0 %v2736_v40, %s2868_s5 }
0x2691   :  { %v2025_v41 = vpop.permute.xlu0 %2024 }
0x2692   :  { %v3396_v46 = vmul.f32 %v2025_v41, %v2010_v34 }
0x2694   :  { %2041 = vrot.lane.b32.xlu1 %v3396_v46, %s2869_s25 }
0x2706   :  { %v2042_v48 = vpop.permute.xlu1 %2041 }
0x2707   :  { %2557 = vmatmul.mubr.msk.f32.vlgmr.msra.gmra.mrb[18].mxu1 %vm90_vm3, %v2042_v48 }
0x27da   :  { %v2111_v8 = vpop.f32.mrb[18].mxu1 }
0x27db   :  { %v2115_v50 = vadd.f32 %v2111_v8, %v1245_v44  ;;  %v2558_v52 = vpop.f32.mrb[19].mxu1 }
0x27dd   :  { %v2116_v53 = vmul.f32 %v2115_v50, %v3046_v22 }
0x27df   :  { %2737 = vtanh.f32 %v2116_v53 }
0x27e9   :  { %v2738_v54 = vpop.eup %2737 }
0x27ea   :  { %v2118_v55 = vmul.f32 %v2738_v54, %v3046_v22 }
0x27ec   :  { %v2119_v56 = vadd.f32 %v2118_v55, %v3049_v28 }
0x27ee   :  { %2122 = vrot.lane.b32.xlu0 %v2119_v56, %s2868_s5  ;;  %v2120_v49 = vmul.f32 %v2119_v56, %v2021_v10 }
0x27f2   :  { %1092 = vrot.lane.b32.xlu0 %v3284_v43, %s2870_s8 }
0x2860   :  { %v2123_v57 = vpop.permute.xlu0 %2122 }
0x2861   :  { %v2125_v59 = vmul.f32 %v2123_v57, %v2119_v56 }
0x2863   :  { %2127 = vrot.lane.b32.xlu1 %v2125_v59, %s2869_s25 }
0x2864   :  { %v1093_v12 = vpop.permute.xlu0 %1092 }
0x2865   :  { %1095 = vst.msk [vmem:[#allocation3] sm:$0xff] %vm90_vm3, %v1093_v12 }
0x2867   :  { %1365 = vrot.lane.b32.xlu1 %v2232_v9, %s2870_s8 }
0x286c   :  { %v2162_v22 = vld [vmem:[#allocation3] sm:$0xff] }
0x286d   :  { %2164 = vst.msk [vmem:[#allocation14] sm:$0xff] %vm90_vm3, %v2162_v22 }
0x28d5   :  { %v2128_v28 = vpop.permute.xlu1 %2127 }
0x28d6   :  { %v2130_v5 = vadd.f32 %v2128_v28, %v2120_v49 }
0x28d8   :  { %2739 = vtanh.f32 %v2130_v5 }
0x28d9   :  { %v1366_v60 = vpop.permute.xlu1 %1365 }
0x28da   :  { %v1368_v43 = vmul.f32 %v1366_v60, %v3273_v36  ;;  %v1483_v42 = vmul.f32 %v3309_v6, %v1366_v60  ;;  %v1592_v11 = vmul.f32 %v3328_v29, %v1366_v60  ;;  %v2233_v6 = vld [vmem:[#allocation6] ss:$0 sm:$0xff]  ;;  %v1701_v29 = vmul.f32 %v3347_v51, %v1366_v60 }
0x28db   :  { %v1810_v20 = vmul.f32 %v3365_v13, %v1366_v60  ;;  %v1919_v21 = vmul.f32 %v3383_v24, %v1366_v60  ;;  %v2028_v1 = vmul.f32 %v3396_v46, %v1366_v60 }
0x28dc   :  { %1370 = vrot.lane.b32.xlu0 %v1368_v43, %s2869_s25 }
0x28e0   :  { %1485 = vrot.lane.b32.xlu0 %v1483_v42, %s2869_s25 }
0x28e2   :  { %v2740_v36 = vpop.eup %2739 }
0x294e   :  { %v1371_v61 = vpop.permute.xlu0 %1370 }
0x294f   :  { %v1373_v63 = vsel %vm90_vm3, %v1371_v61, 0.0 }
0x2950   :  { %1374 = vadd.xlane.f32.xlu1 %v1373_v63 }
0x2952   :  { %v1486_v0 = vpop.permute.xlu0 %1485 }
0x2953   :  { %v1488_v3 = vsel %vm90_vm3, %v1486_v0, 0.0 }
0x2954   :  { %1489 = vadd.xlane.f32.xlu0 %v1488_v3 }
0x2961   :  { %1594 = vrot.lane.b32.xlu1 %v1592_v11, %s2869_s25 }
0x296a   :  { %2133 = vrot.lane.b32.xlu0 %v2740_v36, %s2868_s5 }
0x29dd   :  { %v1375_v14 = vpop.xlane.xlu1 %1374 }
0x29de   :  { %v1382_v15 = vadd.f32 %v2233_v6, %v1375_v14 }
0x29e0   :  { %1384 = vst.msk [vmem:[%s3519_s11] sm:$0xff] %vm1383_vm7, %v1382_v15 }
0x29e1   :  { %v1595_v16 = vpop.permute.xlu1 %1594  ;;  %v1490_v17 = vpop.xlane.xlu0 %1489 }
0x29e2   :  { %v1491_v4 = vadd.f32 %v2233_v6, %v1490_v17  ;;  %v1597_v18 = vsel %vm90_vm3, %v1595_v16, 0.0 }
0x29e3   :  { %1598 = vadd.xlane.f32.xlu0 %v1597_v18 }
0x29e4   :  { %2235 = vst.msk [vmem:[%s3519_s11 + $0x8] sm:$0xff] %vm1383_vm7, %v1491_v4 }
0x29e5   :  { %v2134_v58 = vpop.permute.xlu0 %2133 }
0x29e6   :  { %v2136_v2 = vmul.f32 %v2134_v58, %v2119_v56 }
0x29e8   :  { %v2137_v62 = vmul.f32 %v2136_v2, %v1366_v60 }
0x29f9   :  { %1703 = vrot.lane.b32.xlu0 %v1701_v29, %s2869_s25 }
0x29fd   :  { %1812 = vrot.lane.b32.xlu0 %v1810_v20, %s2869_s25 }
0x2a01   :  { %1921 = vrot.lane.b32.xlu0 %v1919_v21, %s2869_s25 }
0x2a05   :  { %2030 = vrot.lane.b32.xlu0 %v2028_v1, %s2869_s25 }
0x2a09   :  { %2139 = vrot.lane.b32.xlu0 %v2137_v62, %s2869_s25 }
0x2a70   :  { %v1599_v51 = vpop.xlane.xlu0 %1598 }
0x2a71   :  { %v1600_v23 = vadd.f32 %v2233_v6, %v1599_v51 }
0x2a73   :  { %2237 = vst.msk [vmem:[%s3519_s11 + $0x10] sm:$0xff] %vm1383_vm7, %v1600_v23 }
0x2a74   :  { %v1704_v13 = vpop.permute.xlu0 %1703 }
0x2a75   :  { %v1706_v47 = vsel %vm90_vm3, %v1704_v13, 0.0 }
0x2a76   :  { %1707 = vadd.xlane.f32.xlu1 %v1706_v47 }
0x2a78   :  { %v1813_v19 = vpop.permute.xlu0 %1812 }
0x2a79   :  { %v1815_v7 = vsel %vm90_vm3, %v1813_v19, 0.0 }
0x2a7a   :  { %1816 = vadd.xlane.f32.xlu0 %v1815_v7 }
0x2a7c   :  { %v1922_v24 = vpop.permute.xlu0 %1921 }
0x2a7d   :  { %v1924_v25 = vsel %vm90_vm3, %v1922_v24, 0.0 }
0x2a7e   :  { %1925 = vadd.xlane.f32.xlu1 %v1924_v25 }
0x2a80   :  { %v2031_v45 = vpop.permute.xlu0 %2030 }
0x2a81   :  { %v2033_v26 = vsel %vm90_vm3, %v2031_v45, 0.0 }
0x2a82   :  { %2034 = vadd.xlane.f32.xlu1 %v2033_v26 }
0x2a84   :  { %v2140_v27 = vpop.permute.xlu0 %2139 }
0x2a85   :  { %v2142_v30 = vsel %vm90_vm3, %v2140_v27, 0.0 }
0x2a86   :  { %2143 = vadd.xlane.f32.xlu1 %v2142_v30 }
0x2a90   :  { %2154 = vrot.lane.b32.xlu0 %v2130_v5, %s2870_s8 }
0x2a97   :  { %2149 = vrot.lane.b32.xlu1 %v2136_v2, %s2869_s25 }
0x2b03   :  { %v1708_v31 = vpop.xlane.xlu1 %1707 }
0x2b04   :  { %v1709_v32 = vadd.f32 %v2233_v6, %v1708_v31 }
0x2b06   :  { %2239 = vst.msk [vmem:[%s3519_s11 + $0x18] sm:$0xff] %vm1383_vm7, %v1709_v32 }
0x2b07   :  { %v1817_v33 = vpop.xlane.xlu0 %1816 }
0x2b08   :  { %v1818_v34 = vadd.f32 %v2233_v6, %v1817_v33 }
0x2b0a   :  { %2241 = vst.msk [vmem:[%s3519_s11 + $0x20] sm:$0xff] %vm1383_vm7, %v1818_v34 }
0x2b0b   :  { %v1926_v35 = vpop.xlane.xlu1 %1925  ;;  %v2155_v37 = vpop.permute.xlu0 %2154 }
0x2b0c   :  { %v1927_v38 = vadd.f32 %v2233_v6, %v1926_v35  ;;  %2157 = vst.msk [vmem:[#allocation3 + $0x8] sm:$0xff] %vm90_vm3, %v2155_v37 }
0x2b0e   :  { %2243 = vst.msk [vmem:[%s3519_s11 + $0x28] sm:$0xff] %vm1383_vm7, %v1927_v38 }
0x2b0f   :  { %v2035_v39 = vpop.xlane.xlu1 %2034 }
0x2b10   :  { %v2036_v10 = vadd.f32 %v2233_v6, %v2035_v39 }
0x2b12   :  { %2245 = vst.msk [vmem:[%s3519_s11 + $0x30] sm:$0xff] %vm1383_vm7, %v2036_v10 }
0x2b13   :  { %v2144_v40 = vpop.xlane.xlu1 %2143  ;;  %v2163_v41 = vld [vmem:[#allocation3 + $0x8] sm:$0xff] }
0x2b14   :  { %v2145_v46 = vadd.f32 %v2233_v6, %v2144_v40  ;;  %2165 = vst.msk [vmem:[#allocation14 + $0x8] sm:$0xff] %vm90_vm3, %v2163_v41 }
0x2b15   :  { %2818 = shalt.err (!%p2815_p0)
}
0x2b16   :  { %s2819_s14 = scalar_lea.hbm %s3521_s13, 256 }
0x2b17   :  { %p2820_p1 = scmp.ne.s32.totalorder %s3521_s13, %s2819_s14  ;;  %p2823_p2 = scmp.lt.u32.totalorder %s2819_s14, %s3521_s13 }
0x2b19   :  { %p2825_p3 = pnand %p2823_p2, %p2820_p1 }
0x2b1b   :  { %2828 = shalt.err (!%p2825_p3)
}
0x2b1c   :  { %2191 = dma.vmem_to_hbm [thread:$0]  %s2186_s6, 256, %s3521_s13, [#allocation15], %s2861_s21, %s2861_s21, %s2862_s22   ;;  %v2150_v48 = vpop.permute.xlu1 %2149 }
0x2b1d   :  { %2247 = vst.msk [vmem:[%s3519_s11 + $0x38] sm:$0xff] %vm1383_vm7, %v2145_v46  ;;  %s2872_s28 = smov [#allocation13]  }
0x2b1e   :  { %2152 = vst.msk [vmem:[#allocation2 + $0x8] sm:$0xff] %vm90_vm3, %v2150_v48  ;;  %s2173_s0 = sshll.u32 %s2872_s28, 4  ;;  %s2174_s0 = int_to_ptr.vmem [resolvable:$true] %s2173_s0 }
0x2b1f   :  { %s2829_s5 = scalar_lea.vmem %s2174_s0, 256  ;;  %p2834_p5 = scmp.lt.s32.totalorder %s2174_s0, %s2174_s0 }
0x2b20   :  { %p2830_p4 = scmp.ne.s32.totalorder %s2174_s0, %s2829_s5  ;;  %p2835_p6 = scmp.lt.s32.totalorder %s2829_s5, %s2829_s5 }
0x2b22   :  { %p2836_p7 = por %p2835_p6, %p2834_p5 }
0x2b24   :  { %p2837_p8 = pnand %p2836_p7, %p2830_p4 }
0x2b25   :  { %v2159_v44 = vld [vmem:[#allocation2 + $0x8] sm:$0xff] }
0x2b26   :  { %2161 = vst.msk [vmem:[#allocation13 + $0x8] sm:$0xff] %vm90_vm3, %v2159_v44 }
0x2b27   :  { %2840 = shalt.err (!%p2837_p8)
}
0x2b28   :  { %s2841_s11 = scalar_lea.hbm %s3520_s12, 256 }
0x2b29   :  { %p2842_p9 = scmp.ne.s32.totalorder %s3520_s12, %s2841_s11  ;;  %p2845_p10 = scmp.lt.u32.totalorder %s2841_s11, %s3520_s12 }
0x2b2b   :  { %p2847_p11 = pnand %p2845_p10, %p2842_p9 }
0x2b2d   :  { %2850 = shalt.err (!%p2847_p11)
}
0x2b2e   :  { %2179 = dma.vmem_to_hbm [thread:$0]  %s2174_s0, 256, %s3520_s12, [#allocation9], %s2861_s21, %s2861_s21, %s2862_s22  }
0x2b2f   :  { %2855 = dma.done.wait [#allocation9], 256  }
0x2b30   :  { %2856 = vsyncadd [#allocation9], 4294967040 }
0x2b31   :  { %2857 = dma.done.wait [#allocation15], 256  }
0x2b32   :  { %2858 = vsyncadd [#allocation15], 4294967040 }
0x2b33   :  { %2200 = vsyncpa [#allocation8], 1 }
0x2b34   :  { %2201 = vsyncpa [#allocation11], 1 }
0x2b35   :  { %2202 = vsyncpa [#allocation9], 1 }
0x2b36   :  { %2203 = vsyncpa [#allocation15], 1 }

</bundles_post_ra>
